<compile_context>
chip_gen: v5e
topology: v5e:2x2
jax: 0.10.0
libtpu: 0.0.40
codegen_flags: <defaults>
</compile_context>

<pallas_src>
import functools

import jax
import jax.numpy as jnp
from jax import lax
from jax.experimental import pallas as pl
from jax.experimental.pallas import tpu as pltpu


def _conv_stats_kernel(patches_ref, w_ref, out_ref, sum_ref, sq_ref, *, p_total):
    """One (sample, spatial-tile) grid step of the im2col'd grouped conv.

    patches_ref: (1, K, TP)      bf16  im2col tile, K = C_in*kd*kh*kw (channel-major)
    w_ref:       (C_out, K)      bf16  block-diagonal weights (groups folded in)
    out_ref:     (1, C_out, TP)  bf16  lane-dense conv output tile
    sum_ref:     (1, C_out, 1)   f32   per-sample channel sums   (resident accumulator)
    sq_ref:      (1, C_out, 1)   f32   per-sample channel sum-sq (resident accumulator)
    """
    j = pl.program_id(1)

    # The stats blocks' index_map ignores j, so they stay resident in VMEM for the
    # whole spatial sweep of one sample and are written back to HBM exactly once.
    @pl.when(j == 0)
    def _init():
        sum_ref[...] = jnp.zeros_like(sum_ref)
        sq_ref[...] = jnp.zeros_like(sq_ref)

    # Single fat MXU contraction, f32 accumulation.
    acc = jnp.dot(w_ref[...], patches_ref[0],
                  preferred_element_type=jnp.float32)          # (C_out, TP) f32
    yb = acc.astype(out_ref.dtype)
    out_ref[0] = yb                                            # lane-dense store

    # BatchNorm statistics from the same bf16-rounded values that will later be
    # normalised.  The last spatial tile may be partial (cdiv grid, no HBM pad):
    # mask lanes >= P so undefined data from the partial block never enters the
    # sums.  (Invalid lanes of out_ref are dropped by the masked writeback.)
    cout, tpw = yb.shape
    yf = yb.astype(jnp.float32)
    if p_total % tpw != 0:  # static: only emit the mask when a partial tile exists
        lane = lax.broadcasted_iota(jnp.int32, (cout, tpw), 1)
        yf = jnp.where(j * tpw + lane < p_total, yf, 0.0)
    sum_ref[0] += jnp.sum(yf, axis=1, keepdims=True)
    sq_ref[0] += jnp.sum(yf * yf, axis=1, keepdims=True)


def _pick_tile_and_vmem(p, k_total, c_out):
    """Largest lane tile whose full resident footprint fits a per-generation budget."""
    try:  # 128 MiB on v5e/v6e, 64 MiB per TensorCore on v7x.
        vmem_cap = int(pltpu.get_tpu_info().vmem_capacity_bytes)
    except Exception:  # pragma: no cover - conservative (v7x-sized) fallback
        vmem_cap = 64 * 1024 * 1024
    vmem_limit = min(vmem_cap // 2, 96 * 1024 * 1024)   # 32 MiB v7x, 64 MiB v5e/v6e
    budget = (3 * vmem_limit) // 4                       # ~24 MiB on v7x

    def step_bytes(tp):
        return (2 * 2 * k_total * tp        # patches tile, bf16, double-buffered
                + 2 * 2 * c_out * tp        # conv-out tile, bf16, double-buffered
                + 2 * 2 * c_out * k_total   # weights, bf16 (counted as 2 buffers)
                + 3 * 4 * c_out * tp        # f32 accumulator + stats temporaries
                + 4 * 4 * c_out)            # resident stats blocks

    if p < 128:
        return p, vmem_limit                # full-dim lane block (allowed)
    tp = 128
    for cand in (2048, 1024, 512, 256):     # decoupled from P divisibility
        if cand <= p and step_bytes(cand) <= budget:
            tp = cand
            break
    return tp, vmem_limit


@functools.partial(jax.jit, static_argnames=("stride", "groups", "eps", "out_dtype"))
def conv3d_bn_relu(x, weight, gamma, beta, *, stride=(1, 1, 1), groups=1,
                   eps=1e-5, out_dtype=None):
    n, c_in, d, h, w = x.shape
    c_out, cin_g, kd, kh, kw = weight.shape
    assert c_in == cin_g * groups and c_out % groups == 0
    sd, sh, sw = stride
    d_out = (d - kd) // sd + 1
    h_out = (h - kh) // sh + 1
    w_out = (w - kw) // sw + 1
    p = d_out * h_out * w_out
    taps = kd * kh * kw
    k_g = cin_g * taps
    k_total = c_in * taps
    cout_g = c_out // groups
    out_dtype = x.dtype if out_dtype is None else out_dtype

    # ---- im2col by XLA, consuming NCDHW directly (no activation transpose). ----
    # The patches feature dim is channel-major: feature = c*taps + tap with
    # tap = (dz*kh + hy)*kw + wx -- exactly the row-major flatten of the OIDHW
    # weight's (I, kd, kh, kw) axes (covered by both groups=1 and groups=2 checks).
    # TODO(synk): build the (K, TP) patch tile in VMEM from a halo'd raw-input
    # block via manual DMA to remove this taps x HBM round trip entirely.
    patches = lax.conv_general_dilated_patches(
        x.astype(jnp.bfloat16),
        filter_shape=(kd, kh, kw),
        window_strides=(sd, sh, sw),
        padding="VALID",
        dimension_numbers=("NCDHW", "OIDHW", "NCDHW"))   # (n, K, Do, Ho, Wo)
    patches = patches.reshape(n, k_total, p)             # free reshape, no pad copy

    # ---- Fold groups into one block-diagonal (C_out, K) weight matrix. ----
    w2 = weight.reshape(c_out, k_g).astype(jnp.bfloat16)
    if groups == 1:
        w_bd = w2
    else:
        w_bd = jnp.zeros((c_out, k_total), jnp.bfloat16)
        for g in range(groups):
            w_bd = w_bd.at[g * cout_g:(g + 1) * cout_g,
                           g * k_g:(g + 1) * k_g].set(w2[g * cout_g:(g + 1) * cout_g])

    tp, vmem_limit = _pick_tile_and_vmem(p, k_total, c_out)
    num_pt = pl.cdiv(p, tp)   # partial last tile handled in-kernel (no jnp.pad)

    kernel = functools.partial(_conv_stats_kernel, p_total=p)
    conv_out, sums, sqs = pl.pallas_call(
        kernel,
        out_shape=(
            jax.ShapeDtypeStruct((n, c_out, p), jnp.bfloat16),
            jax.ShapeDtypeStruct((n, c_out, 1), jnp.float32),
            jax.ShapeDtypeStruct((n, c_out, 1), jnp.float32),
        ),
        grid=(n, num_pt),
        in_specs=[
            pl.BlockSpec((1, k_total, tp), lambda i, j: (i, 0, j)),
            # Constant index_map: the pipeline only fetches this block once.
            # (For large weights add pipeline_mode=pl.Buffered(1) to also drop the
            # second buffer; at ~7-14 KiB here the headroom gain is negligible.)
            pl.BlockSpec((c_out, k_total), lambda i, j: (0, 0)),
        ],
        out_specs=(
            pl.BlockSpec((1, c_out, tp), lambda i, j: (i, 0, j)),
            pl.BlockSpec((1, c_out, 1), lambda i, j: (i, 0, 0)),
            pl.BlockSpec((1, c_out, 1), lambda i, j: (i, 0, 0)),
        ),
        compiler_params=pltpu.CompilerParams(
            # Batch stays "parallel" (v7x megacore splits samples); the spatial-tile
            # axis carries the stats reduction -> "arbitrary".
            # TODO(synk): when n == 1 on v7x, split the spatial-tile axis into an
            # outer parallel factor of 2 plus an inner arbitrary axis.
            dimension_semantics=("parallel", "arbitrary"),
            vmem_limit_bytes=vmem_limit),
    )(patches, w_bd)

    # ---- BatchNorm3d (training-mode batch stats) + ReLU: fused XLA epilogue. ----
    count = float(n * p)
    mean = jnp.sum(sums, axis=(0, 2)) / count                       # (C_out,)
    # Biased variance via E[x^2]-E[x]^2 combined in f32.  Note: cancels when
    # |mean| >> std; adequate for conv outputs of roughly centred activations.
    var = jnp.maximum(jnp.sum(sqs, axis=(0, 2)) / count - mean * mean, 0.0)
    inv_std = lax.rsqrt(var + eps)
    scale = gamma.astype(jnp.float32) * inv_std
    shift = beta.astype(jnp.float32) - mean * scale
    # One fused elementwise pass: read bf16 conv_out, write out_dtype (default f32,
    # matching the PyTorch module; pass bf16 to halve epilogue write traffic).
    y = jnp.maximum(conv_out.astype(jnp.float32) * scale[None, :, None]
                    + shift[None, :, None], 0.0)
    # (n, C_out, P) is already NCDHW-ordered -> plain reshape, no transpose.
    return y.astype(out_dtype).reshape(n, c_out, d_out, h_out, w_out)


def _reference(x, w, gamma, beta, *, stride, groups, eps=1e-5):
    """Pure-XLA reference with matching numerics (bf16 conv operands, f32 accum)."""
    conv = lax.conv_general_dilated(
        x.astype(jnp.bfloat16), w.astype(jnp.bfloat16),
        window_strides=stride, padding="VALID",
        dimension_numbers=("NCDHW", "OIDHW", "NCDHW"),
        feature_group_count=groups,
        preferred_element_type=jnp.float32)
    mean = conv.mean(axis=(0, 2, 3, 4))
    var = conv.var(axis=(0, 2, 3, 4))   # biased, as used by BN normalisation
    b = lambda v: v[None, :, None, None, None]
    y = (conv - b(mean)) * lax.rsqrt(b(var) + eps) * b(gamma) + b(beta)
    return jnp.maximum(y, 0.0)


if __name__ == "__main__":
    def _run_case(name, n, c_in, c_out, dhw, ksize, stride, groups, seed):
        key = jax.random.PRNGKey(seed)
        kx, kw_, kg, kb = jax.random.split(key, 4)
        d, h, w = dhw
        x = jax.random.normal(kx, (n, c_in, d, h, w), dtype=jnp.float32)
        weight = 0.1 * jax.random.normal(
            kw_, (c_out, c_in // groups, *ksize), dtype=jnp.float32)
        gamma = 1.0 + 0.1 * jax.random.normal(kg, (c_out,), dtype=jnp.float32)
        beta = 0.1 * jax.random.normal(kb, (c_out,), dtype=jnp.float32)

        out = conv3d_bn_relu(x, weight, gamma, beta, stride=stride, groups=groups)
        out = jax.block_until_ready(out)
        ref = _reference(x, weight, gamma, beta, stride=stride, groups=groups)
        assert out.shape == ref.shape, (name, out.shape, ref.shape)
        err = float(jnp.max(jnp.abs(out - ref)))
        # bf16 conv intermediate + bf16-based BN stats + summation-order diffs.
        assert jnp.allclose(out, ref, atol=2e-2, rtol=2e-2), (name, err)

    # Conv3d_BN_ReLU(in=4, out=8, kernel=(3,3,3), stride=(1,1,1))
    _run_case("groups1", 2, 4, 8, (8, 16, 16), (3, 3, 3), (1, 1, 1), 1, 0)
    # Conv3d_BN_ReLU(in=8, out=16, kernel=(3,3,3), stride=(1,2,2), groups=2)
    _run_case("groups2_strided", 2, 8, 16, (8, 13, 13), (3, 3, 3), (1, 2, 2), 2, 1)

    print("KERNEL_OK")
</pallas_src>

<mosaic_0001>
module attributes {stable_mosaic.version = 11 : i64} {
  func.func @_conv_stats_kernel(%arg0: i32, %arg1: i32, %arg2: memref<1x108x1024xbf16, #tpu.memory_space<vmem>>, %arg3: memref<8x108xbf16, #tpu.memory_space<vmem>>, %arg4: memref<1x8x1024xbf16, #tpu.memory_space<vmem>>, %arg5: memref<1x8x1xf32, #tpu.memory_space<vmem>>, %arg6: memref<1x8x1xf32, #tpu.memory_space<vmem>>) attributes {dimension_semantics = [#tpu.dimension_semantics<parallel>, #tpu.dimension_semantics<arbitrary>], iteration_bounds = array<i64: 2, 2>, scalar_prefetch = 0 : i64, scratch_operands = 0 : i64, tpu.core_type = #tpu.core_type<tc>, window_params = [{transform_indices = @transform_0, window_bounds = array<i64: 1, 108, 1024>}, {pipeline_mode = #tpu.pipeline_mode<synchronous>, transform_indices = @transform_1, window_bounds = array<i64: 8, 108>}, {transform_indices = @transform_2, window_bounds = array<i64: 1, 8, 1024>}, {transform_indices = @transform_3, window_bounds = array<i64: 1, 8, 1>}, {transform_indices = @transform_4, window_bounds = array<i64: 1, 8, 1>}]} {
    %c0_i32 = arith.constant 0 : i32
    %0 = arith.cmpi eq, %arg1, %c0_i32 : i32
    %1 = arith.extui %0 : i1 to i32
    %c0_i32_0 = arith.constant 0 : i32
    %2 = arith.cmpi ne, %1, %c0_i32_0 : i32
    scf.if %2 {
      %cst_23 = arith.constant 0.000000e+00 : f32
      %37 = vector.broadcast %cst_23 : f32 to vector<1x8x1xf32>
      %c0_24 = arith.constant 0 : index
      %c0_25 = arith.constant 0 : index
      %c0_26 = arith.constant 0 : index
      %38 = vector.load %arg5[%c0_24, %c0_25, %c0_26] : memref<1x8x1xf32, #tpu.memory_space<vmem>>, vector<1x8x1xf32>
      tpu.vector_store %arg5[%c0_24, %c0_25, %c0_26], %37 {strides = array<i32>} : memref<1x8x1xf32, #tpu.memory_space<vmem>>, vector<1x8x1xf32>,
      %cst_27 = arith.constant 0.000000e+00 : f32
      %39 = vector.broadcast %cst_27 : f32 to vector<1x8x1xf32>
      %c0_28 = arith.constant 0 : index
      %c0_29 = arith.constant 0 : index
      %c0_30 = arith.constant 0 : index
      %40 = vector.load %arg6[%c0_28, %c0_29, %c0_30] : memref<1x8x1xf32, #tpu.memory_space<vmem>>, vector<1x8x1xf32>
      tpu.vector_store %arg6[%c0_28, %c0_29, %c0_30], %39 {strides = array<i32>} : memref<1x8x1xf32, #tpu.memory_space<vmem>>, vector<1x8x1xf32>,
    } else {
    }
    %c0 = arith.constant 0 : index
    %c0_1 = arith.constant 0 : index
    %3 = vector.load %arg3[%c0, %c0_1] : memref<8x108xbf16, #tpu.memory_space<vmem>>, vector<8x108xbf16>
    %c0_2 = arith.constant 0 : index
    %c0_3 = arith.constant 0 : index
    %c0_4 = arith.constant 0 : index
    %4 = vector.load %arg2[%c0_2, %c0_3, %c0_4] : memref<1x108x1024xbf16, #tpu.memory_space<vmem>>, vector<1x108x1024xbf16>
    %5 = vector.shape_cast %4 : vector<1x108x1024xbf16> to vector<108x1024xbf16>
    %cst = arith.constant dense<0.000000e+00> : vector<8x1024xf32>
    %6 = tpu.matmul %3, %5, %cst {dimension_numbers = #tpu.dot_dimension_numbers<[1], [0], [0], [1], [0, 0, 1, 1], [], []>} : vector<8x108xbf16>, vector<108x1024xbf16>, vector<8x1024xf32> -> vector<8x1024xf32>
    %7 = arith.truncf %6 : vector<8x1024xf32> to vector<8x1024xbf16>
    %c0_5 = arith.constant 0 : index
    %c0_6 = arith.constant 0 : index
    %c0_7 = arith.constant 0 : index
    %8 = vector.load %arg4[%c0_5, %c0_6, %c0_7] : memref<1x8x1024xbf16, #tpu.memory_space<vmem>>, vector<1x8x1024xbf16>
    %9 = vector.shape_cast %8 : vector<1x8x1024xbf16> to vector<8x1024xbf16>
    %10 = vector.shape_cast %7 : vector<8x1024xbf16> to vector<1x8x1024xbf16>
    tpu.vector_store %arg4[%c0_5, %c0_6, %c0_7], %10 {strides = array<i32>} : memref<1x8x1024xbf16, #tpu.memory_space<vmem>>, vector<1x8x1024xbf16>,
    %11 = arith.extf %7 : vector<8x1024xbf16> to vector<8x1024xf32>
    %12 = tpu.iota {dimensions = array<i32: 1>} : vector<8x1024xi32>
    %c1024_i32 = arith.constant 1024 : i32
    %13 = arith.muli %arg1, %c1024_i32 : i32
    %14 = vector.broadcast %13 : i32 to vector<8x1024xi32>
    %15 = arith.addi %14, %12 : vector<8x1024xi32>
    %c1176_i32 = arith.constant 1176 : i32
    %16 = vector.broadcast %c1176_i32 : i32 to vector<8x1024xi32>
    %17 = arith.cmpi slt, %15, %16 : vector<8x1024xi32>
    %cst_8 = arith.constant 0.000000e+00 : f32
    %18 = vector.broadcast %cst_8 : f32 to vector<8x1024xf32>
    %19 = arith.select %17, %11, %18 : vector<8x1024xi1>, vector<8x1024xf32>
    %c0_9 = arith.constant 0 : index
    %c0_10 = arith.constant 0 : index
    %c0_11 = arith.constant 0 : index
    %20 = vector.load %arg5[%c0_9, %c0_10, %c0_11] : memref<1x8x1xf32, #tpu.memory_space<vmem>>, vector<1x8x1xf32>
    %21 = vector.shape_cast %20 : vector<1x8x1xf32> to vector<8x1xf32>
    %cst_12 = arith.constant dense<0.000000e+00> : vector<8xf32>
    %22 = vector.multi_reduction <add>, %19, %cst_12 [1] : vector<8x1024xf32> to vector<8xf32>
    %23 = vector.shape_cast %22 : vector<8xf32> to vector<8x1xf32>
    %24 = arith.addf %21, %23 : vector<8x1xf32>
    %c0_13 = arith.constant 0 : index
    %c0_14 = arith.constant 0 : index
    %c0_15 = arith.constant 0 : index
    %25 = vector.load %arg5[%c0_13, %c0_14, %c0_15] : memref<1x8x1xf32, #tpu.memory_space<vmem>>, vector<1x8x1xf32>
    %26 = vector.shape_cast %25 : vector<1x8x1xf32> to vector<8x1xf32>
    %27 = vector.shape_cast %24 : vector<8x1xf32> to vector<1x8x1xf32>
    tpu.vector_store %arg5[%c0_13, %c0_14, %c0_15], %27 {strides = array<i32>} : memref<1x8x1xf32, #tpu.memory_space<vmem>>, vector<1x8x1xf32>,
    %c0_16 = arith.constant 0 : index
    %c0_17 = arith.constant 0 : index
    %c0_18 = arith.constant 0 : index
    %28 = vector.load %arg6[%c0_16, %c0_17, %c0_18] : memref<1x8x1xf32, #tpu.memory_space<vmem>>, vector<1x8x1xf32>
    %29 = vector.shape_cast %28 : vector<1x8x1xf32> to vector<8x1xf32>
    %30 = arith.mulf %19, %19 : vector<8x1024xf32>
    %cst_19 = arith.constant dense<0.000000e+00> : vector<8xf32>
    %31 = vector.multi_reduction <add>, %30, %cst_19 [1] : vector<8x1024xf32> to vector<8xf32>
    %32 = vector.shape_cast %31 : vector<8xf32> to vector<8x1xf32>
    %33 = arith.addf %29, %32 : vector<8x1xf32>
    %c0_20 = arith.constant 0 : index
    %c0_21 = arith.constant 0 : index
    %c0_22 = arith.constant 0 : index
    %34 = vector.load %arg6[%c0_20, %c0_21, %c0_22] : memref<1x8x1xf32, #tpu.memory_space<vmem>>, vector<1x8x1xf32>
    %35 = vector.shape_cast %34 : vector<1x8x1xf32> to vector<8x1xf32>
    %36 = vector.shape_cast %33 : vector<8x1xf32> to vector<1x8x1xf32>
    tpu.vector_store %arg6[%c0_20, %c0_21, %c0_22], %36 {strides = array<i32>} : memref<1x8x1xf32, #tpu.memory_space<vmem>>, vector<1x8x1xf32>,
    return
  }
  func.func @transform_0(%arg0: i32, %arg1: i32) -> (i32, i32, i32) {
    %c0_i32 = arith.constant 0 : i32
    %c0_i32_0 = arith.constant 0 : i32
    return %arg0, %c0_i32, %arg1 : i32, i32, i32
  }
  func.func @transform_1(%arg0: i32, %arg1: i32) -> (i32, i32) {
    %c0_i32 = arith.constant 0 : i32
    %c0_i32_0 = arith.constant 0 : i32
    %c0_i32_1 = arith.constant 0 : i32
    return %c0_i32, %c0_i32_0 : i32, i32
  }
  func.func @transform_2(%arg0: i32, %arg1: i32) -> (i32, i32, i32) {
    %c0_i32 = arith.constant 0 : i32
    %c0_i32_0 = arith.constant 0 : i32
    return %arg0, %c0_i32, %arg1 : i32, i32, i32
  }
  func.func @transform_3(%arg0: i32, %arg1: i32) -> (i32, i32, i32) {
    %c0_i32 = arith.constant 0 : i32
    %c0_i32_0 = arith.constant 0 : i32
    %c0_i32_1 = arith.constant 0 : i32
    return %arg0, %c0_i32, %c0_i32_0 : i32, i32, i32
  }
  func.func @transform_4(%arg0: i32, %arg1: i32) -> (i32, i32, i32) {
    %c0_i32 = arith.constant 0 : i32
    %c0_i32_0 = arith.constant 0 : i32
    %c0_i32_1 = arith.constant 0 : i32
    return %arg0, %c0_i32, %c0_i32_0 : i32, i32, i32
  }
}

</mosaic_0001>

<bundles_post_ra>
// kernel: conv3d_bn_relu.1
= control target key start
LH: loop header
LB: loop body
LE: loop exit
PB: predicated region body
PF: predicated region fallthrough
CT: control target
= control target key end

     0   :  { %s3973_s0 = inlined_call_operand.vmem [shape: bf16[2,108,1176], index: 0, kind: input, shape index: {}]   ;;  %s3974_s1 = inlined_call_operand.vmem [shape: bf16[8,108], index: 1, kind: input, shape index: {}]   ;;  %s3975_s2 = inlined_call_operand.vmem [shape: bf16[2,8,1176], index: 2, kind: output, shape index: {0}]   ;;  %s3976_s3 = inlined_call_operand.vmem [shape: f32[2,8,1], index: 3, kind: output, shape index: {1}]   ;;  %s3977_s4 = inlined_call_operand.vmem [shape: f32[2,8,1], index: 4, kind: output, shape index: {2}]  }
   0x1   :  { %3981 = sst [smem:[#allocation7_spill]] %s3973_s0 }
   0x2   :  { %s2881_s15 = smov 0   ;;  %s2883_s16 = smov 0  }
   0x3   :  { %s2885_s17 = smov 0   ;;  %s2887_s18 = smov 0  }
   0x4   :  { %s2889_s19 = smov 0   ;;  %s2891_s20 = smov 0  }
   0x5   :  { %s2893_s21 = smov 0  }
   0x6 LB: > { %3982 = sst [smem:[#allocation4_spill]] %s2717_s20  ;;  %s24_s22 = sadd.s32 1, %s2713_s19  ;;  %s2721_s21 = sphi %s2893_s21, %s15_s21   ;;  %s2717_s20 = sphi %s2891_s20, %s4019_s20   ;;  %s2713_s19 = sphi %s2889_s19, %s4023_s19   ;;  %s2709_s18 = sphi %s2887_s18, %s4017_s18   ;;  %s2705_s17 = sphi %s2885_s17, %s4022_s17   ;;  %s2701_s16 = sphi %s2883_s16, %s4021_s16   ;;  %s2697_s15 = sphi %s2881_s15, %s4020_s15  }
   0x7   : > { %p25_p0 = scmp.ge.s32.totalorder %s24_s22, 2  ;;  %s27_s23 = sadd.s32 1, %s2717_s20 }
   0x8   : > { %s1854_s24 = sadd.s32 4294967295, %s2721_s21   ;;  %p43_p1 = scmp.ne.s32.totalorder %s2701_s16, %s2697_s15 }
   0x9   : > { %s4025_s22 = smov (%p25_p0, %s24_s22), 0  ;;  %s4027_s23 = smov (!%p25_p0, %s27_s23), %s2717_s20 }
   0xa   : > { %3983 = sst [smem:[#allocation5_spill]] %s4025_s22  ;;  %p44_p2 = scmp.eq.s32.totalorder %s2721_s21, 0 }
   0xb   : > { %p29_p3 = scmp.ge.s32.totalorder %s4027_s23, 2  ;;  %p96_p4 = scmp.eq.s32.totalorder %s1854_s24, 3 }
   0xc   : > { %s32_s25 = ssub.s32 %s2713_s19, %s4025_s22  ;;  %p45_p5 = por %p44_p2, %p43_p1 }
   0xd   : > { %s4029_s23 = smov (%p29_p3, %s4027_s23), 0  ;;  %p2929_p6 = por %p96_p4, %p43_p1 }
   0xe   : > { %3984 = sst [smem:[#allocation6_spill]] %s4029_s23  ;;  %s31_s27 = ssub.s32 %s2717_s20, %s4029_s23 }
   0xf   : > { %s33_s28 = sor.u32 %s32_s25, %s31_s27  ;;  %s36_s29 = sadd.s32 1, %s2701_s16 }
  0x10   : > { %p34_p7 = scmp.eq.s32.totalorder %s33_s28, 0  ;;  %p1857_p8 = scmp.ge.s32.totalorder %s2721_s21, 4 }
  0x12   : > { %s2937_s30 = scalar_select %p34_p7, %s2701_s16, %s36_s29  }
  0x13   : > { %173 = sbr.rel (%p1857_p8) target bundleno = 266 (0x10a), region = 20 }
  0x18   : > { %176 = sbr.rel (!%p45_p5) target bundleno = 266 (0x10a), region = 24  ;;  %s178_s5 = sand.u32 (%p45_p5), 1, %s2701_s16  }
  0x19   : > { %s1858_s6 = sshll.u32 (%p45_p5), %s2713_s19, 3  ;;  %s2218_s7 = smul.u32 (%p45_p5), 448, %s178_s5 }
  0x1a   : > { %s182_s8 = ssub.s32 (%p45_p5), 10, %s1858_s6  ;;  %s2219_s9 = smul.u32 (%p45_p5), 140, %s2717_s20 }
  0x1b   : > { %p183_p9 = scmp.lt.s32.totalorder (%p45_p5), %s182_s8, 8  ;;  %s3986_s0 = sld [smem:[#allocation7_spill]] (%p45_p5) }
  0x1c   : > { %s188_s10 = sadd.s32 (%p45_p5), %s2219_s9, %s1858_s6  ;;  %s2950_s27 = scalar_lea.vmem (%p45_p5), [#allocation2], %s2218_s7  }
  0x1d   : > { %s4031_s8 = smov (!%p183_p9, %s182_s8), 8  ;;  %s1860_s12 = sshll.u32 %s188_s10, 2 }
  0x1e   : > { %s185_s11 = smul.u32 56, %s4031_s8  ;;  %s2948_s25 = sshll.u32 %s4031_s8, 2 }
  0x20   : > { %p1862_p10 = scmp.eq.s32.totalorder %s185_s11, 0 }
  0x21   : > { %s2946_s24 = scalar_lea.vmem %s3986_s0, %s1860_s12   ;;  %p195_p11 = scmp.lt.u32.totalorder (!%p1862_p10), %s2948_s25, 8 }
  0x22   : > { %194 = sbr.rel (%p1862_p10) target bundleno = 266 (0x10a), region = 28 }
  0x27   : > { %198 = sbr.rel (%p195_p11) target bundleno = 244 (0xf4), region = 32  ;;  %s2954_s28 = sand.u32 (!%p195_p11), 7, %s2948_s25  }
  0x28   : > { %p241_p12 = scmp.eq.s32.totalorder (!%p195_p11), %s2954_s28, 0  ;;  %p1863_p13 = scmp.ne.s32.totalorder (!%p195_p11), %s2954_s28, 0 }
  0x2c   : > { %244 = sbr.rel (%p1863_p13) target bundleno = 135 (0x87), region = 47  ;;  %s245_s29 = sshrl.u32 (!%p1863_p13), %s2948_s25, 3 }
  0x2d   : > { %s2961_s5 = sshrl.u32 (!%p1863_p13), %s245_s29, 2 }
  0x2e   : > { %p1864_p0 = scmp.le.s32.totalorder (!%p1863_p13), %s2961_s5, 0 }
  0x31   : > { %1697 = sbr.rel (%p1864_p0) target bundleno = 111 (0x6f), region = 253  ;;  %s3987_s6 = smov (!%p1864_p0), %s2950_s27 }
  0x32   : > { %s3988_s7 = smov (!%p1864_p0), %s2946_s24  ;;  %s2970_s8 = smov (!%p1864_p0), 0  }
  0x33   : > { %s2972_s9 = smov (!%p1864_p0), 0  }
  0x36 LB: >> { %v256_v0 = vld [vmem:[%s2729_s7] sm:$0xff]  ;;  %v258_v1 = vld [vmem:[%s2729_s7 + $0x8] sm:$0xff]  ;;  %v260_v2 = vld [vmem:[%s2729_s7 + $0x10] sm:$0xff]  ;;  %s368_s10 = sadd.s32 1, %s2733_s8  ;;  %s250_s9 = sadd.s32 1, %s2737_s9   ;;  %s2737_s9 = sphi %s2972_s9, %s250_s9   ;;  %s2733_s8 = sphi %s2970_s8, %s3991_s8   ;;  %s2729_s7 = sphi %s3988_s7, %s3990_s7   ;;  %s2725_s6 = sphi %s3987_s6, %s3989_s6  }
  0x37   : >> { %257 = vst [vmem:[%s2725_s6] sm:$0xff] %v256_v0  ;;  %v262_v3 = vld [vmem:[%s2729_s7 + $0x18] sm:$0xff]  ;;  %p369_p1 = scmp.ge.s32.totalorder %s368_s10, %s2961_s5  ;;  %v264_v4 = vld [vmem:[%s2729_s7 + $0x28] sm:$0xff]  ;;  %v266_v5 = vld [vmem:[%s2729_s7 + $0x30] sm:$0xff]  ;;  %p249_p2 = scmp.ge.s32.totalorder %s250_s9, %s2961_s5 }
  0x38   : >> { %259 = vst [vmem:[%s2725_s6 + $0x8] sm:$0xff] %v258_v1  ;;  %v268_v6 = vld [vmem:[%s2729_s7 + $0x38] sm:$0xff]  ;;  %v270_v7 = vld [vmem:[%s2729_s7 + $0x40] sm:$0xff]  ;;  %v272_v8 = vld [vmem:[%s2729_s7 + $0x50] sm:$0xff] }
  0x39   : >> { %261 = vst [vmem:[%s2725_s6 + $0x10] sm:$0xff] %v260_v2  ;;  %s4033_s10 = smov (%p369_p1, %s368_s10), 0  ;;  %v274_v9 = vld [vmem:[%s2729_s7 + $0x58] sm:$0xff]  ;;  %v276_v10 = vld [vmem:[%s2729_s7 + $0x60] sm:$0xff]  ;;  %v278_v11 = vld [vmem:[%s2729_s7 + $0x68] sm:$0xff] }
  0x3a   : >> { %263 = vst [vmem:[%s2725_s6 + $0x18] sm:$0xff] %v262_v3  ;;  %s1865_s11 = sshll.u32 %s4033_s10, 5  ;;  %v280_v12 = vld [vmem:[%s2729_s7 + $0x78] sm:$0xff]  ;;  %v282_v13 = vld [vmem:[%s2729_s7 + $0x80] sm:$0xff]  ;;  %v284_v14 = vld [vmem:[%s2729_s7 + $0x88] sm:$0xff]  ;;  %s3991_s8 = smov %s4033_s10 }
  0x3b   : >> { %265 = vst [vmem:[%s2725_s6 + $0x20] sm:$0xff] %v264_v4  ;;  %s3004_s12 = scalar_lea.vmem %s2946_s24, %s1865_s11   ;;  %s3007_s13 = scalar_lea.vmem %s2950_s27, %s1865_s11 [#allocation2]   ;;  %v286_v15 = vld [vmem:[%s2729_s7 + $0x90] sm:$0xff]  ;;  %v288_v16 = vld [vmem:[%s2729_s7 + $0xa0] sm:$0xff]  ;;  %v290_v17 = vld [vmem:[%s2729_s7 + $0xa8] sm:$0xff] }
  0x3c   : >> { %267 = vst [vmem:[%s2725_s6 + $0x28] sm:$0xff] %v266_v5  ;;  %v292_v18 = vld [vmem:[%s2729_s7 + $0xb0] sm:$0xff]  ;;  %v294_v19 = vld [vmem:[%s2729_s7 + $0xb8] sm:$0xff]  ;;  %v296_v20 = vld [vmem:[%s2729_s7 + $0xc8] sm:$0xff] }
  0x3d   : >> { %269 = vst [vmem:[%s2725_s6 + $0x30] sm:$0xff] %v268_v6  ;;  %v298_v21 = vld [vmem:[%s2729_s7 + $0xd0] sm:$0xff]  ;;  %v300_v22 = vld [vmem:[%s2729_s7 + $0xd8] sm:$0xff]  ;;  %v302_v23 = vld [vmem:[%s2729_s7 + $0xe0] sm:$0xff] }
  0x3e   : >> { %271 = vst [vmem:[%s2725_s6 + $0x38] sm:$0xff] %v270_v7  ;;  %v304_v24 = vld [vmem:[%s2729_s7 + $0xf0] sm:$0xff]  ;;  %v306_v25 = vld [vmem:[%s2729_s7 + $0xf8] sm:$0xff]  ;;  %v308_v26 = vld [vmem:[%s2729_s7 + $0x100] sm:$0xff] }
  0x3f   : >> { %273 = vst [vmem:[%s2725_s6 + $0x40] sm:$0xff] %v272_v8  ;;  %v310_v27 = vld [vmem:[%s2729_s7 + $0x108] sm:$0xff]  ;;  %v312_v28 = vld [vmem:[%s2729_s7 + $0x118] sm:$0xff]  ;;  %v314_v29 = vld [vmem:[%s2729_s7 + $0x120] sm:$0xff] }
  0x40   : >> { %275 = vst [vmem:[%s2725_s6 + $0x48] sm:$0xff] %v274_v9  ;;  %v316_v30 = vld [vmem:[%s2729_s7 + $0x128] sm:$0xff]  ;;  %v318_v31 = vld [vmem:[%s2729_s7 + $0x130] sm:$0xff]  ;;  %v320_v32 = vld [vmem:[%s2729_s7 + $0x140] sm:$0xff] }
  0x41   : >> { %277 = vst [vmem:[%s2725_s6 + $0x50] sm:$0xff] %v276_v10  ;;  %v322_v33 = vld [vmem:[%s2729_s7 + $0x148] sm:$0xff]  ;;  %v324_v34 = vld [vmem:[%s2729_s7 + $0x150] sm:$0xff]  ;;  %v326_v35 = vld [vmem:[%s2729_s7 + $0x158] sm:$0xff] }
  0x42   : >> { %279 = vst [vmem:[%s2725_s6 + $0x58] sm:$0xff] %v278_v11  ;;  %v328_v36 = vld [vmem:[%s2729_s7 + $0x168] sm:$0xff]  ;;  %v330_v37 = vld [vmem:[%s2729_s7 + $0x170] sm:$0xff]  ;;  %v332_v38 = vld [vmem:[%s2729_s7 + $0x178] sm:$0xff] }
  0x43   : >> { %281 = vst [vmem:[%s2725_s6 + $0x60] sm:$0xff] %v280_v12  ;;  %v334_v39 = vld [vmem:[%s2729_s7 + $0x180] sm:$0xff]  ;;  %v336_v40 = vld [vmem:[%s2729_s7 + $0x190] sm:$0xff]  ;;  %v338_v41 = vld [vmem:[%s2729_s7 + $0x198] sm:$0xff] }
  0x44   : >> { %283 = vst [vmem:[%s2725_s6 + $0x68] sm:$0xff] %v282_v13  ;;  %v340_v42 = vld [vmem:[%s2729_s7 + $0x1a0] sm:$0xff]  ;;  %v342_v43 = vld [vmem:[%s2729_s7 + $0x1a8] sm:$0xff]  ;;  %v344_v44 = vld [vmem:[%s2729_s7 + $0x1b8] sm:$0xff] }
  0x45   : >> { %285 = vst [vmem:[%s2725_s6 + $0x70] sm:$0xff] %v284_v14  ;;  %v346_v45 = vld [vmem:[%s2729_s7 + $0x1c0] sm:$0xff]  ;;  %v348_v46 = vld [vmem:[%s2729_s7 + $0x1c8] sm:$0xff]  ;;  %v350_v47 = vld [vmem:[%s2729_s7 + $0x1d0] sm:$0xff] }
  0x46   : >> { %287 = vst [vmem:[%s2725_s6 + $0x78] sm:$0xff] %v286_v15  ;;  %v352_v48 = vld [vmem:[%s2729_s7 + $0x1e0] sm:$0xff]  ;;  %v354_v49 = vld [vmem:[%s2729_s7 + $0x1e8] sm:$0xff]  ;;  %v356_v50 = vld [vmem:[%s2729_s7 + $0x1f0] sm:$0xff] }
  0x47   : >> { %289 = vst [vmem:[%s2725_s6 + $0x80] sm:$0xff] %v288_v16  ;;  %v358_v51 = vld [vmem:[%s2729_s7 + $0x1f8] sm:$0xff]  ;;  %v360_v52 = vld [vmem:[%s2729_s7 + $0x208] sm:$0xff]  ;;  %v362_v53 = vld [vmem:[%s2729_s7 + $0x210] sm:$0xff] }
  0x48   : >> { %291 = vst [vmem:[%s2725_s6 + $0x88] sm:$0xff] %v290_v17  ;;  %v364_v54 = vld [vmem:[%s2729_s7 + $0x218] sm:$0xff]  ;;  %v366_v55 = vld [vmem:[%s2729_s7 + $0x220] sm:$0xff]  ;;  %s3990_s7 = smov %s3004_s12 }
  0x49   : >> { %293 = vst [vmem:[%s2725_s6 + $0x90] sm:$0xff] %v292_v18 }
  0x4a   : >> { %295 = vst [vmem:[%s2725_s6 + $0x98] sm:$0xff] %v294_v19 }
  0x4b   : >> { %297 = vst [vmem:[%s2725_s6 + $0xa0] sm:$0xff] %v296_v20 }
  0x4c   : >> { %299 = vst [vmem:[%s2725_s6 + $0xa8] sm:$0xff] %v298_v21 }
  0x4d   : >> { %301 = vst [vmem:[%s2725_s6 + $0xb0] sm:$0xff] %v300_v22 }
  0x4e   : >> { %303 = vst [vmem:[%s2725_s6 + $0xb8] sm:$0xff] %v302_v23 }
  0x4f   : >> { %305 = vst [vmem:[%s2725_s6 + $0xc0] sm:$0xff] %v304_v24 }
  0x50   : >> { %307 = vst [vmem:[%s2725_s6 + $0xc8] sm:$0xff] %v306_v25 }
  0x51   : >> { %309 = vst [vmem:[%s2725_s6 + $0xd0] sm:$0xff] %v308_v26 }
  0x52   : >> { %311 = vst [vmem:[%s2725_s6 + $0xd8] sm:$0xff] %v310_v27 }
  0x53   : >> { %313 = vst [vmem:[%s2725_s6 + $0xe0] sm:$0xff] %v312_v28 }
  0x54   : >> { %315 = vst [vmem:[%s2725_s6 + $0xe8] sm:$0xff] %v314_v29 }
  0x55   : >> { %317 = vst [vmem:[%s2725_s6 + $0xf0] sm:$0xff] %v316_v30 }
  0x56   : >> { %319 = vst [vmem:[%s2725_s6 + $0xf8] sm:$0xff] %v318_v31 }
  0x57   : >> { %321 = vst [vmem:[%s2725_s6 + $0x100] sm:$0xff] %v320_v32 }
  0x58   : >> { %323 = vst [vmem:[%s2725_s6 + $0x108] sm:$0xff] %v322_v33 }
  0x59   : >> { %325 = vst [vmem:[%s2725_s6 + $0x110] sm:$0xff] %v324_v34 }
  0x5a   : >> { %327 = vst [vmem:[%s2725_s6 + $0x118] sm:$0xff] %v326_v35 }
  0x5b   : >> { %329 = vst [vmem:[%s2725_s6 + $0x120] sm:$0xff] %v328_v36 }
  0x5c   : >> { %331 = vst [vmem:[%s2725_s6 + $0x128] sm:$0xff] %v330_v37 }
  0x5d   : >> { %333 = vst [vmem:[%s2725_s6 + $0x130] sm:$0xff] %v332_v38 }
  0x5e   : >> { %335 = vst [vmem:[%s2725_s6 + $0x138] sm:$0xff] %v334_v39 }
  0x5f   : >> { %337 = vst [vmem:[%s2725_s6 + $0x140] sm:$0xff] %v336_v40 }
  0x60   : >> { %339 = vst [vmem:[%s2725_s6 + $0x148] sm:$0xff] %v338_v41 }
  0x61   : >> { %341 = vst [vmem:[%s2725_s6 + $0x150] sm:$0xff] %v340_v42 }
  0x62   : >> { %343 = vst [vmem:[%s2725_s6 + $0x158] sm:$0xff] %v342_v43 }
  0x63   : >> { %345 = vst [vmem:[%s2725_s6 + $0x160] sm:$0xff] %v344_v44 }
  0x64   : >> { %347 = vst [vmem:[%s2725_s6 + $0x168] sm:$0xff] %v346_v45 }
  0x65   : >> { %349 = vst [vmem:[%s2725_s6 + $0x170] sm:$0xff] %v348_v46 }
  0x66   : >> { %351 = vst [vmem:[%s2725_s6 + $0x178] sm:$0xff] %v350_v47 }
  0x67   : >> { %353 = vst [vmem:[%s2725_s6 + $0x180] sm:$0xff] %v352_v48 }
  0x68   : >> { %355 = vst [vmem:[%s2725_s6 + $0x188] sm:$0xff] %v354_v49 }
  0x69   : >> { %357 = vst [vmem:[%s2725_s6 + $0x190] sm:$0xff] %v356_v50 }
  0x6a   : >> { %359 = vst [vmem:[%s2725_s6 + $0x198] sm:$0xff] %v358_v51  ;;  %252 = sbr.rel (!%p249_p2) target bundleno = 54 (0x36), region = 259 }
  0x6b   : >> { %361 = vst [vmem:[%s2725_s6 + $0x1a0] sm:$0xff] %v360_v52 }
  0x6c   : >> { %363 = vst [vmem:[%s2725_s6 + $0x1a8] sm:$0xff] %v362_v53 }
  0x6d   : >> { %365 = vst [vmem:[%s2725_s6 + $0x1b0] sm:$0xff] %v364_v54 }
  0x6e   : >> { %367 = vst [vmem:[%s2725_s6 + $0x1b8] sm:$0xff] %v366_v55  ;;  %s3989_s6 = smov %s3007_s13 }
  0x6f PF: > { %s3121_s14 = sand.u32 3, %s245_s29   ;;  %s2154_s11 = sshll.u32 %s2961_s5, 5 }
  0x70   : > { %s3125_s0 = scalar_lea.vmem %s2946_s24, %s2154_s11   ;;  %s3128_s23 = scalar_lea.vmem %s2950_s27, %s2154_s11 [#allocation2]  }
  0x71   : > { %p1870_p3 = scmp.le.s32.totalorder %s3121_s14, 0 }
  0x72   : > { %s3992_s9 = smov (!%p1870_p3), %s3128_s23  ;;  %s3993_s6 = smov (!%p1870_p3), %s3125_s0 }
  0x73   : > { %1711 = sbr.rel (%p1870_p3) target bundleno = 135 (0x87), region = 264  ;;  %s3137_s7 = smov (!%p1870_p3), 0  }
  0x74   : > { %s3139_s8 = smov (!%p1870_p3), 0  }
  0x78 LB: >> { %v391_v56 = vld [vmem:[%s2745_s6] sm:$0xff]  ;;  %v393_v57 = vld [vmem:[%s2745_s6 + $0x28] sm:$0xff]  ;;  %v395_v58 = vld [vmem:[%s2745_s6 + $0x50] sm:$0xff]  ;;  %s419_s29 = sadd.s32 1, %s2749_s7  ;;  %s385_s8 = sadd.s32 1, %s2753_s8   ;;  %s2753_s8 = sphi %s3139_s8, %s385_s8   ;;  %s2749_s7 = sphi %s3137_s7, %s3996_s7   ;;  %s2745_s6 = sphi %s3993_s6, %s3995_s6   ;;  %s2741_s9 = sphi %s3992_s9, %s3994_s9  }
  0x79   : >> { %392 = vst [vmem:[%s2741_s9] sm:$0xff] %v391_v56  ;;  %v397_v59 = vld [vmem:[%s2745_s6 + $0x78] sm:$0xff]  ;;  %p420_p4 = scmp.ge.s32.totalorder %s419_s29, %s3121_s14  ;;  %v399_v60 = vld [vmem:[%s2745_s6 + $0xa0] sm:$0xff]  ;;  %v401_v61 = vld [vmem:[%s2745_s6 + $0xc8] sm:$0xff]  ;;  %p384_p5 = scmp.ge.s32.totalorder %s385_s8, %s3121_s14 }
  0x7a   : >> { %394 = vst [vmem:[%s2741_s9 + $0x20] sm:$0xff] %v393_v57  ;;  %v403_v62 = vld [vmem:[%s2745_s6 + $0xf0] sm:$0xff]  ;;  %v405_v63 = vld [vmem:[%s2745_s6 + $0x118] sm:$0xff]  ;;  %v407_v0 = vld [vmem:[%s2745_s6 + $0x140] sm:$0xff] }
  0x7b   : >> { %396 = vst [vmem:[%s2741_s9 + $0x40] sm:$0xff] %v395_v58  ;;  %s4035_s29 = smov (%p420_p4, %s419_s29), 0  ;;  %v409_v1 = vld [vmem:[%s2745_s6 + $0x168] sm:$0xff]  ;;  %v411_v2 = vld [vmem:[%s2745_s6 + $0x190] sm:$0xff]  ;;  %v413_v3 = vld [vmem:[%s2745_s6 + $0x1b8] sm:$0xff] }
  0x7c   : >> { %398 = vst [vmem:[%s2741_s9 + $0x60] sm:$0xff] %v397_v59  ;;  %s1871_s5 = sshll.u32 %s4035_s29, 3  ;;  %v415_v4 = vld [vmem:[%s2745_s6 + $0x1e0] sm:$0xff]  ;;  %v417_v5 = vld [vmem:[%s2745_s6 + $0x208] sm:$0xff]  ;;  %s3996_s7 = smov %s4035_s29 }
  0x7d   : >> { %400 = vst [vmem:[%s2741_s9 + $0x80] sm:$0xff] %v399_v60  ;;  %s424_s10 = scalar_lea.vmem %s3125_s0, %s1871_s5   ;;  %s425_s12 = scalar_lea.vmem %s3128_s23, %s1871_s5 [#allocation2]  }
  0x7e   : >> { %402 = vst [vmem:[%s2741_s9 + $0xa0] sm:$0xff] %v401_v61  ;;  %s3995_s6 = smov %s424_s10 }
  0x7f   : >> { %404 = vst [vmem:[%s2741_s9 + $0xc0] sm:$0xff] %v403_v62 }
  0x80   : >> { %406 = vst [vmem:[%s2741_s9 + $0xe0] sm:$0xff] %v405_v63 }
  0x81   : >> { %408 = vst [vmem:[%s2741_s9 + $0x100] sm:$0xff] %v407_v0 }
  0x82   : >> { %410 = vst [vmem:[%s2741_s9 + $0x120] sm:$0xff] %v409_v1  ;;  %387 = sbr.rel (!%p384_p5) target bundleno = 120 (0x78), region = 270 }
  0x83   : >> { %412 = vst [vmem:[%s2741_s9 + $0x140] sm:$0xff] %v411_v2 }
  0x84   : >> { %414 = vst [vmem:[%s2741_s9 + $0x160] sm:$0xff] %v413_v3 }
  0x85   : >> { %416 = vst [vmem:[%s2741_s9 + $0x180] sm:$0xff] %v415_v4 }
  0x86   : >> { %418 = vst [vmem:[%s2741_s9 + $0x1a0] sm:$0xff] %v417_v5  ;;  %s3994_s9 = smov %s425_s12 }
  0x87 PF: > { %428 = sbr.rel (%p241_p12) target bundleno = 244 (0xf4), region = 65  ;;  %s430_s13 = ssub.s32 (!%p241_p12), %s2948_s25, %s2954_s28 }
  0x88   : > { %s434_s11 = sshrl.u32 (!%p241_p12), %s2948_s25, 3  ;;  %s3198_s5 = scalar_lea.vmem (!%p241_p12), %s2946_s24, %s430_s13 }
  0x89   : > { %s3201_s10 = scalar_lea.vmem (!%p241_p12), %s2950_s27, %s430_s13 [#allocation2]  ;;  %s3205_s8 = sshrl.u32 (!%p241_p12), %s434_s11, 2 }
  0x8a   : > { %p1873_p7 = scmp.le.s32.totalorder (!%p241_p12), %s3205_s8, 0 }
  0x8c   : > { %1725 = sbr.rel (%p1873_p7) target bundleno = 202 (0xca), region = 275  ;;  %s3997_s0 = smov (!%p1873_p7), %s2950_s27 }
  0x8d   : > { %s3998_s23 = smov (!%p1873_p7), %s2946_s24  ;;  %s3214_s14 = smov (!%p1873_p7), 0  }
  0x8e   : > { %s3216_s9 = smov (!%p1873_p7), 0  }
  0x91 LB: >> { %v445_v6 = vld [vmem:[%s2761_s23] sm:$0xff]  ;;  %v447_v7 = vld [vmem:[%s2761_s23 + $0x8] sm:$0xff]  ;;  %v449_v8 = vld [vmem:[%s2761_s23 + $0x10] sm:$0xff]  ;;  %s557_s6 = sadd.s32 1, %s2765_s14  ;;  %s439_s9 = sadd.s32 1, %s2769_s9   ;;  %s2769_s9 = sphi %s3216_s9, %s439_s9   ;;  %s2765_s14 = sphi %s3214_s14, %s4001_s14   ;;  %s2761_s23 = sphi %s3998_s23, %s4000_s23   ;;  %s2757_s0 = sphi %s3997_s0, %s3999_s0  }
  0x92   : >> { %446 = vst [vmem:[%s2757_s0] sm:$0xff] %v445_v6  ;;  %v451_v9 = vld [vmem:[%s2761_s23 + $0x18] sm:$0xff]  ;;  %p558_p8 = scmp.ge.s32.totalorder %s557_s6, %s3205_s8  ;;  %v453_v10 = vld [vmem:[%s2761_s23 + $0x28] sm:$0xff]  ;;  %v455_v11 = vld [vmem:[%s2761_s23 + $0x30] sm:$0xff]  ;;  %p438_p9 = scmp.ge.s32.totalorder %s439_s9, %s3205_s8 }
  0x93   : >> { %448 = vst [vmem:[%s2757_s0 + $0x8] sm:$0xff] %v447_v7  ;;  %v457_v12 = vld [vmem:[%s2761_s23 + $0x38] sm:$0xff]  ;;  %v459_v13 = vld [vmem:[%s2761_s23 + $0x40] sm:$0xff]  ;;  %v461_v14 = vld [vmem:[%s2761_s23 + $0x50] sm:$0xff] }
  0x94   : >> { %450 = vst [vmem:[%s2757_s0 + $0x10] sm:$0xff] %v449_v8  ;;  %s4037_s6 = smov (%p558_p8, %s557_s6), 0  ;;  %v463_v15 = vld [vmem:[%s2761_s23 + $0x58] sm:$0xff]  ;;  %v465_v16 = vld [vmem:[%s2761_s23 + $0x60] sm:$0xff]  ;;  %v467_v17 = vld [vmem:[%s2761_s23 + $0x68] sm:$0xff] }
  0x95   : >> { %452 = vst [vmem:[%s2757_s0 + $0x18] sm:$0xff] %v451_v9  ;;  %s1874_s7 = sshll.u32 %s4037_s6, 5  ;;  %v469_v18 = vld [vmem:[%s2761_s23 + $0x78] sm:$0xff]  ;;  %v471_v19 = vld [vmem:[%s2761_s23 + $0x80] sm:$0xff]  ;;  %v473_v20 = vld [vmem:[%s2761_s23 + $0x88] sm:$0xff]  ;;  %s4001_s14 = smov %s4037_s6 }
  0x96   : >> { %454 = vst [vmem:[%s2757_s0 + $0x20] sm:$0xff] %v453_v10  ;;  %s3248_s29 = scalar_lea.vmem %s2946_s24, %s1874_s7   ;;  %s3251_s12 = scalar_lea.vmem %s2950_s27, %s1874_s7 [#allocation2]   ;;  %v475_v21 = vld [vmem:[%s2761_s23 + $0x90] sm:$0xff]  ;;  %v477_v22 = vld [vmem:[%s2761_s23 + $0xa0] sm:$0xff]  ;;  %v479_v23 = vld [vmem:[%s2761_s23 + $0xa8] sm:$0xff] }
  0x97   : >> { %456 = vst [vmem:[%s2757_s0 + $0x28] sm:$0xff] %v455_v11  ;;  %v481_v24 = vld [vmem:[%s2761_s23 + $0xb0] sm:$0xff]  ;;  %v483_v25 = vld [vmem:[%s2761_s23 + $0xb8] sm:$0xff]  ;;  %v485_v26 = vld [vmem:[%s2761_s23 + $0xc8] sm:$0xff] }
  0x98   : >> { %458 = vst [vmem:[%s2757_s0 + $0x30] sm:$0xff] %v457_v12  ;;  %v487_v27 = vld [vmem:[%s2761_s23 + $0xd0] sm:$0xff]  ;;  %v489_v28 = vld [vmem:[%s2761_s23 + $0xd8] sm:$0xff]  ;;  %v491_v29 = vld [vmem:[%s2761_s23 + $0xe0] sm:$0xff] }
  0x99   : >> { %460 = vst [vmem:[%s2757_s0 + $0x38] sm:$0xff] %v459_v13  ;;  %v493_v30 = vld [vmem:[%s2761_s23 + $0xf0] sm:$0xff]  ;;  %v495_v31 = vld [vmem:[%s2761_s23 + $0xf8] sm:$0xff]  ;;  %v497_v32 = vld [vmem:[%s2761_s23 + $0x100] sm:$0xff] }
  0x9a   : >> { %462 = vst [vmem:[%s2757_s0 + $0x40] sm:$0xff] %v461_v14  ;;  %v499_v33 = vld [vmem:[%s2761_s23 + $0x108] sm:$0xff]  ;;  %v501_v34 = vld [vmem:[%s2761_s23 + $0x118] sm:$0xff]  ;;  %v503_v35 = vld [vmem:[%s2761_s23 + $0x120] sm:$0xff] }
  0x9b   : >> { %464 = vst [vmem:[%s2757_s0 + $0x48] sm:$0xff] %v463_v15  ;;  %v505_v36 = vld [vmem:[%s2761_s23 + $0x128] sm:$0xff]  ;;  %v507_v37 = vld [vmem:[%s2761_s23 + $0x130] sm:$0xff]  ;;  %v509_v38 = vld [vmem:[%s2761_s23 + $0x140] sm:$0xff] }
  0x9c   : >> { %466 = vst [vmem:[%s2757_s0 + $0x50] sm:$0xff] %v465_v16  ;;  %v511_v39 = vld [vmem:[%s2761_s23 + $0x148] sm:$0xff]  ;;  %v513_v40 = vld [vmem:[%s2761_s23 + $0x150] sm:$0xff]  ;;  %v515_v41 = vld [vmem:[%s2761_s23 + $0x158] sm:$0xff] }
  0x9d   : >> { %468 = vst [vmem:[%s2757_s0 + $0x58] sm:$0xff] %v467_v17  ;;  %v517_v42 = vld [vmem:[%s2761_s23 + $0x168] sm:$0xff]  ;;  %v519_v43 = vld [vmem:[%s2761_s23 + $0x170] sm:$0xff]  ;;  %v521_v44 = vld [vmem:[%s2761_s23 + $0x178] sm:$0xff] }
  0x9e   : >> { %470 = vst [vmem:[%s2757_s0 + $0x60] sm:$0xff] %v469_v18  ;;  %v523_v45 = vld [vmem:[%s2761_s23 + $0x180] sm:$0xff]  ;;  %v525_v46 = vld [vmem:[%s2761_s23 + $0x190] sm:$0xff]  ;;  %v527_v47 = vld [vmem:[%s2761_s23 + $0x198] sm:$0xff] }
  0x9f   : >> { %472 = vst [vmem:[%s2757_s0 + $0x68] sm:$0xff] %v471_v19  ;;  %v529_v48 = vld [vmem:[%s2761_s23 + $0x1a0] sm:$0xff]  ;;  %v531_v49 = vld [vmem:[%s2761_s23 + $0x1a8] sm:$0xff]  ;;  %v533_v50 = vld [vmem:[%s2761_s23 + $0x1b8] sm:$0xff] }
  0xa0   : >> { %474 = vst [vmem:[%s2757_s0 + $0x70] sm:$0xff] %v473_v20  ;;  %v535_v51 = vld [vmem:[%s2761_s23 + $0x1c0] sm:$0xff]  ;;  %v537_v52 = vld [vmem:[%s2761_s23 + $0x1c8] sm:$0xff]  ;;  %v539_v53 = vld [vmem:[%s2761_s23 + $0x1d0] sm:$0xff] }
  0xa1   : >> { %476 = vst [vmem:[%s2757_s0 + $0x78] sm:$0xff] %v475_v21  ;;  %v541_v54 = vld [vmem:[%s2761_s23 + $0x1e0] sm:$0xff]  ;;  %v543_v55 = vld [vmem:[%s2761_s23 + $0x1e8] sm:$0xff]  ;;  %v545_v56 = vld [vmem:[%s2761_s23 + $0x1f0] sm:$0xff] }
  0xa2   : >> { %478 = vst [vmem:[%s2757_s0 + $0x80] sm:$0xff] %v477_v22  ;;  %v547_v57 = vld [vmem:[%s2761_s23 + $0x1f8] sm:$0xff]  ;;  %v549_v58 = vld [vmem:[%s2761_s23 + $0x208] sm:$0xff]  ;;  %v551_v59 = vld [vmem:[%s2761_s23 + $0x210] sm:$0xff] }
  0xa3   : >> { %480 = vst [vmem:[%s2757_s0 + $0x88] sm:$0xff] %v479_v23  ;;  %v553_v60 = vld [vmem:[%s2761_s23 + $0x218] sm:$0xff]  ;;  %v555_v61 = vld [vmem:[%s2761_s23 + $0x220] sm:$0xff]  ;;  %s4000_s23 = smov %s3248_s29 }
  0xa4   : >> { %482 = vst [vmem:[%s2757_s0 + $0x90] sm:$0xff] %v481_v24 }
  0xa5   : >> { %484 = vst [vmem:[%s2757_s0 + $0x98] sm:$0xff] %v483_v25 }
  0xa6   : >> { %486 = vst [vmem:[%s2757_s0 + $0xa0] sm:$0xff] %v485_v26 }
  0xa7   : >> { %488 = vst [vmem:[%s2757_s0 + $0xa8] sm:$0xff] %v487_v27 }
  0xa8   : >> { %490 = vst [vmem:[%s2757_s0 + $0xb0] sm:$0xff] %v489_v28 }
  0xa9   : >> { %492 = vst [vmem:[%s2757_s0 + $0xb8] sm:$0xff] %v491_v29 }
  0xaa   : >> { %494 = vst [vmem:[%s2757_s0 + $0xc0] sm:$0xff] %v493_v30 }
  0xab   : >> { %496 = vst [vmem:[%s2757_s0 + $0xc8] sm:$0xff] %v495_v31 }
  0xac   : >> { %498 = vst [vmem:[%s2757_s0 + $0xd0] sm:$0xff] %v497_v32 }
  0xad   : >> { %500 = vst [vmem:[%s2757_s0 + $0xd8] sm:$0xff] %v499_v33 }
  0xae   : >> { %502 = vst [vmem:[%s2757_s0 + $0xe0] sm:$0xff] %v501_v34 }
  0xaf   : >> { %504 = vst [vmem:[%s2757_s0 + $0xe8] sm:$0xff] %v503_v35 }
  0xb0   : >> { %506 = vst [vmem:[%s2757_s0 + $0xf0] sm:$0xff] %v505_v36 }
  0xb1   : >> { %508 = vst [vmem:[%s2757_s0 + $0xf8] sm:$0xff] %v507_v37 }
  0xb2   : >> { %510 = vst [vmem:[%s2757_s0 + $0x100] sm:$0xff] %v509_v38 }
  0xb3   : >> { %512 = vst [vmem:[%s2757_s0 + $0x108] sm:$0xff] %v511_v39 }
  0xb4   : >> { %514 = vst [vmem:[%s2757_s0 + $0x110] sm:$0xff] %v513_v40 }
  0xb5   : >> { %516 = vst [vmem:[%s2757_s0 + $0x118] sm:$0xff] %v515_v41 }
  0xb6   : >> { %518 = vst [vmem:[%s2757_s0 + $0x120] sm:$0xff] %v517_v42 }
  0xb7   : >> { %520 = vst [vmem:[%s2757_s0 + $0x128] sm:$0xff] %v519_v43 }
  0xb8   : >> { %522 = vst [vmem:[%s2757_s0 + $0x130] sm:$0xff] %v521_v44 }
  0xb9   : >> { %524 = vst [vmem:[%s2757_s0 + $0x138] sm:$0xff] %v523_v45 }
  0xba   : >> { %526 = vst [vmem:[%s2757_s0 + $0x140] sm:$0xff] %v525_v46 }
  0xbb   : >> { %528 = vst [vmem:[%s2757_s0 + $0x148] sm:$0xff] %v527_v47 }
  0xbc   : >> { %530 = vst [vmem:[%s2757_s0 + $0x150] sm:$0xff] %v529_v48 }
  0xbd   : >> { %532 = vst [vmem:[%s2757_s0 + $0x158] sm:$0xff] %v531_v49 }
  0xbe   : >> { %534 = vst [vmem:[%s2757_s0 + $0x160] sm:$0xff] %v533_v50 }
  0xbf   : >> { %536 = vst [vmem:[%s2757_s0 + $0x168] sm:$0xff] %v535_v51 }
  0xc0   : >> { %538 = vst [vmem:[%s2757_s0 + $0x170] sm:$0xff] %v537_v52 }
  0xc1   : >> { %540 = vst [vmem:[%s2757_s0 + $0x178] sm:$0xff] %v539_v53 }
  0xc2   : >> { %542 = vst [vmem:[%s2757_s0 + $0x180] sm:$0xff] %v541_v54 }
  0xc3   : >> { %544 = vst [vmem:[%s2757_s0 + $0x188] sm:$0xff] %v543_v55 }
  0xc4   : >> { %546 = vst [vmem:[%s2757_s0 + $0x190] sm:$0xff] %v545_v56 }
  0xc5   : >> { %548 = vst [vmem:[%s2757_s0 + $0x198] sm:$0xff] %v547_v57  ;;  %441 = sbr.rel (!%p438_p9) target bundleno = 145 (0x91), region = 281 }
  0xc6   : >> { %550 = vst [vmem:[%s2757_s0 + $0x1a0] sm:$0xff] %v549_v58 }
  0xc7   : >> { %552 = vst [vmem:[%s2757_s0 + $0x1a8] sm:$0xff] %v551_v59 }
  0xc8   : >> { %554 = vst [vmem:[%s2757_s0 + $0x1b0] sm:$0xff] %v553_v60 }
  0xc9   : >> { %556 = vst [vmem:[%s2757_s0 + $0x1b8] sm:$0xff] %v555_v61  ;;  %s3999_s0 = smov %s3251_s12 }
  0xca PF: > { %s3365_s13 = sand.u32 3, %s434_s11   ;;  %s2156_s7 = sshll.u32 %s3205_s8, 5 }
  0xcb   : > { %s3369_s22 = scalar_lea.vmem %s2946_s24, %s2156_s7   ;;  %s3372_s20 = scalar_lea.vmem %s2950_s27, %s2156_s7 [#allocation2]  }
  0xcc   : > { %p1879_p10 = scmp.le.s32.totalorder %s3365_s13, 0 }
  0xcd   : > { %s4002_s9 = smov (!%p1879_p10), %s3372_s20  ;;  %s4003_s0 = smov (!%p1879_p10), %s3369_s22 }
  0xce   : > { %1739 = sbr.rel (%p1879_p10) target bundleno = 226 (0xe2), region = 286  ;;  %s3381_s23 = smov (!%p1879_p10), 0  }
  0xcf   : > { %s3383_s14 = smov (!%p1879_p10), 0  }
  0xd3 LB: >> { %v580_v62 = vld [vmem:[%s2777_s0] sm:$0xff]  ;;  %v582_v63 = vld [vmem:[%s2777_s0 + $0x28] sm:$0xff]  ;;  %v584_v0 = vld [vmem:[%s2777_s0 + $0x50] sm:$0xff]  ;;  %s608_s11 = sadd.s32 1, %s2781_s23  ;;  %s574_s14 = sadd.s32 1, %s2785_s14   ;;  %s2785_s14 = sphi %s3383_s14, %s574_s14   ;;  %s2781_s23 = sphi %s3381_s23, %s4006_s23   ;;  %s2777_s0 = sphi %s4003_s0, %s4005_s0   ;;  %s2773_s9 = sphi %s4002_s9, %s4004_s9  }
  0xd4   : >> { %581 = vst [vmem:[%s2773_s9] sm:$0xff] %v580_v62  ;;  %v586_v1 = vld [vmem:[%s2777_s0 + $0x78] sm:$0xff]  ;;  %p609_p11 = scmp.ge.s32.totalorder %s608_s11, %s3365_s13  ;;  %v588_v2 = vld [vmem:[%s2777_s0 + $0xa0] sm:$0xff]  ;;  %v590_v3 = vld [vmem:[%s2777_s0 + $0xc8] sm:$0xff]  ;;  %p573_p12 = scmp.ge.s32.totalorder %s574_s14, %s3365_s13 }
  0xd5   : >> { %583 = vst [vmem:[%s2773_s9 + $0x20] sm:$0xff] %v582_v63  ;;  %v592_v4 = vld [vmem:[%s2777_s0 + $0xf0] sm:$0xff]  ;;  %v594_v5 = vld [vmem:[%s2777_s0 + $0x118] sm:$0xff]  ;;  %v596_v6 = vld [vmem:[%s2777_s0 + $0x140] sm:$0xff] }
  0xd6   : >> { %585 = vst [vmem:[%s2773_s9 + $0x40] sm:$0xff] %v584_v0  ;;  %s4039_s11 = smov (%p609_p11, %s608_s11), 0  ;;  %v598_v7 = vld [vmem:[%s2777_s0 + $0x168] sm:$0xff]  ;;  %v600_v8 = vld [vmem:[%s2777_s0 + $0x190] sm:$0xff]  ;;  %v602_v9 = vld [vmem:[%s2777_s0 + $0x1b8] sm:$0xff] }
  0xd7   : >> { %587 = vst [vmem:[%s2773_s9 + $0x60] sm:$0xff] %v586_v1  ;;  %s1880_s8 = sshll.u32 %s4039_s11, 3  ;;  %v604_v10 = vld [vmem:[%s2777_s0 + $0x1e0] sm:$0xff]  ;;  %v606_v11 = vld [vmem:[%s2777_s0 + $0x208] sm:$0xff]  ;;  %s4006_s23 = smov %s4039_s11 }
  0xd8   : >> { %589 = vst [vmem:[%s2773_s9 + $0x80] sm:$0xff] %v588_v2  ;;  %s613_s6 = scalar_lea.vmem %s3369_s22, %s1880_s8   ;;  %s614_s29 = scalar_lea.vmem %s3372_s20, %s1880_s8 [#allocation2]  }
  0xd9   : >> { %591 = vst [vmem:[%s2773_s9 + $0xa0] sm:$0xff] %v590_v3  ;;  %s4005_s0 = smov %s613_s6 }
  0xda   : >> { %593 = vst [vmem:[%s2773_s9 + $0xc0] sm:$0xff] %v592_v4 }
  0xdb   : >> { %595 = vst [vmem:[%s2773_s9 + $0xe0] sm:$0xff] %v594_v5 }
  0xdc   : >> { %597 = vst [vmem:[%s2773_s9 + $0x100] sm:$0xff] %v596_v6 }
  0xdd   : >> { %599 = vst [vmem:[%s2773_s9 + $0x120] sm:$0xff] %v598_v7  ;;  %576 = sbr.rel (!%p573_p12) target bundleno = 211 (0xd3), region = 292 }
  0xde   : >> { %601 = vst [vmem:[%s2773_s9 + $0x140] sm:$0xff] %v600_v8 }
  0xdf   : >> { %603 = vst [vmem:[%s2773_s9 + $0x160] sm:$0xff] %v602_v9 }
  0xe0   : >> { %605 = vst [vmem:[%s2773_s9 + $0x180] sm:$0xff] %v604_v10 }
  0xe1   : >> { %607 = vst [vmem:[%s2773_s9 + $0x1a0] sm:$0xff] %v606_v11  ;;  %s4004_s9 = smov %s614_s29 }
  0xe2 PF: > { %s2851_s12 = smov 1  }
  0xe3   : > { %s615_s7 = sshll.u32 %s2851_s12, %s2954_s28 }
  0xe4   : > { %s1882_s14 = sadd.s32 4294967295, %s615_s7 }
  0xe5   : > { %v625_v12 = vld [vmem:[%s3198_s5] sm:%s1882_s14]  ;;  %v627_v13 = vld [vmem:[%s3198_s5 + $0x28] sm:%s1882_s14] }
  0xe6   : > { %626 = vst [vmem:[%s3201_s10] sm:%s1882_s14] %v625_v12  ;;  %v629_v14 = vld [vmem:[%s3198_s5 + $0x50] sm:%s1882_s14] }
  0xe7   : > { %628 = vst [vmem:[%s3201_s10 + $0x20] sm:%s1882_s14] %v627_v13  ;;  %v631_v15 = vld [vmem:[%s3198_s5 + $0x78] sm:%s1882_s14] }
  0xe8   : > { %630 = vst [vmem:[%s3201_s10 + $0x40] sm:%s1882_s14] %v629_v14  ;;  %v633_v16 = vld [vmem:[%s3198_s5 + $0xa0] sm:%s1882_s14] }
  0xe9   : > { %632 = vst [vmem:[%s3201_s10 + $0x60] sm:%s1882_s14] %v631_v15  ;;  %v635_v17 = vld [vmem:[%s3198_s5 + $0xc8] sm:%s1882_s14] }
  0xea   : > { %634 = vst [vmem:[%s3201_s10 + $0x80] sm:%s1882_s14] %v633_v16  ;;  %v637_v18 = vld [vmem:[%s3198_s5 + $0xf0] sm:%s1882_s14] }
  0xeb   : > { %636 = vst [vmem:[%s3201_s10 + $0xa0] sm:%s1882_s14] %v635_v17  ;;  %v639_v19 = vld [vmem:[%s3198_s5 + $0x118] sm:%s1882_s14] }
  0xec   : > { %638 = vst [vmem:[%s3201_s10 + $0xc0] sm:%s1882_s14] %v637_v18  ;;  %v641_v20 = vld [vmem:[%s3198_s5 + $0x140] sm:%s1882_s14] }
  0xed   : > { %640 = vst [vmem:[%s3201_s10 + $0xe0] sm:%s1882_s14] %v639_v19  ;;  %v643_v21 = vld [vmem:[%s3198_s5 + $0x168] sm:%s1882_s14] }
  0xee   : > { %642 = vst [vmem:[%s3201_s10 + $0x100] sm:%s1882_s14] %v641_v20  ;;  %v645_v22 = vld [vmem:[%s3198_s5 + $0x190] sm:%s1882_s14] }
  0xef   : > { %644 = vst [vmem:[%s3201_s10 + $0x120] sm:%s1882_s14] %v643_v21  ;;  %v647_v23 = vld [vmem:[%s3198_s5 + $0x1b8] sm:%s1882_s14] }
  0xf0   : > { %646 = vst [vmem:[%s3201_s10 + $0x140] sm:%s1882_s14] %v645_v22  ;;  %v649_v24 = vld [vmem:[%s3198_s5 + $0x1e0] sm:%s1882_s14] }
  0xf1   : > { %648 = vst [vmem:[%s3201_s10 + $0x160] sm:%s1882_s14] %v647_v23  ;;  %v651_v25 = vld [vmem:[%s3198_s5 + $0x208] sm:%s1882_s14] }
  0xf2   : > { %650 = vst [vmem:[%s3201_s10 + $0x180] sm:%s1882_s14] %v649_v24 }
  0xf3   : > { %652 = vst [vmem:[%s3201_s10 + $0x1a0] sm:%s1882_s14] %v651_v25 }
  0xf4 PF: > { %p1883_p13 = scmp.ge.u32.totalorder %s2948_s25, 8 }
  0xf5   : > { %s2852_s20 = smov (!%p1883_p13), 1  }
  0xf6   : > { %201 = sbr.rel (%p1883_p13) target bundleno = 266 (0x10a), region = 36  ;;  %s202_s22 = sshll.u32 (!%p1883_p13), %s2852_s20, %s2948_s25 }
  0xf7   : > { %s1884_s28 = sadd.s32 (!%p1883_p13), 4294967295, %s202_s22 }
  0xfb   : > { %v212_v26 = vld [vmem:[%s2946_s24] sm:%s1884_s28]  ;;  %v214_v27 = vld [vmem:[%s2946_s24 + $0x28] sm:%s1884_s28] }
  0xfc   : > { %213 = vst [vmem:[%s2950_s27] sm:%s1884_s28] %v212_v26  ;;  %v216_v28 = vld [vmem:[%s2946_s24 + $0x50] sm:%s1884_s28] }
  0xfd   : > { %215 = vst [vmem:[%s2950_s27 + $0x20] sm:%s1884_s28] %v214_v27  ;;  %v218_v29 = vld [vmem:[%s2946_s24 + $0x78] sm:%s1884_s28] }
  0xfe   : > { %217 = vst [vmem:[%s2950_s27 + $0x40] sm:%s1884_s28] %v216_v28  ;;  %v220_v30 = vld [vmem:[%s2946_s24 + $0xa0] sm:%s1884_s28] }
  0xff   : > { %219 = vst [vmem:[%s2950_s27 + $0x60] sm:%s1884_s28] %v218_v29  ;;  %v222_v31 = vld [vmem:[%s2946_s24 + $0xc8] sm:%s1884_s28] }
 0x100   : > { %221 = vst [vmem:[%s2950_s27 + $0x80] sm:%s1884_s28] %v220_v30  ;;  %v224_v32 = vld [vmem:[%s2946_s24 + $0xf0] sm:%s1884_s28] }
 0x101   : > { %223 = vst [vmem:[%s2950_s27 + $0xa0] sm:%s1884_s28] %v222_v31  ;;  %v226_v33 = vld [vmem:[%s2946_s24 + $0x118] sm:%s1884_s28] }
 0x102   : > { %225 = vst [vmem:[%s2950_s27 + $0xc0] sm:%s1884_s28] %v224_v32  ;;  %v228_v34 = vld [vmem:[%s2946_s24 + $0x140] sm:%s1884_s28] }
 0x103   : > { %227 = vst [vmem:[%s2950_s27 + $0xe0] sm:%s1884_s28] %v226_v33  ;;  %v230_v35 = vld [vmem:[%s2946_s24 + $0x168] sm:%s1884_s28] }
 0x104   : > { %229 = vst [vmem:[%s2950_s27 + $0x100] sm:%s1884_s28] %v228_v34  ;;  %v232_v36 = vld [vmem:[%s2946_s24 + $0x190] sm:%s1884_s28] }
 0x105   : > { %231 = vst [vmem:[%s2950_s27 + $0x120] sm:%s1884_s28] %v230_v35  ;;  %v234_v37 = vld [vmem:[%s2946_s24 + $0x1b8] sm:%s1884_s28] }
 0x106   : > { %233 = vst [vmem:[%s2950_s27 + $0x140] sm:%s1884_s28] %v232_v36  ;;  %v236_v38 = vld [vmem:[%s2946_s24 + $0x1e0] sm:%s1884_s28] }
 0x107   : > { %235 = vst [vmem:[%s2950_s27 + $0x160] sm:%s1884_s28] %v234_v37  ;;  %v238_v39 = vld [vmem:[%s2946_s24 + $0x208] sm:%s1884_s28] }
 0x108   : > { %237 = vst [vmem:[%s2950_s27 + $0x180] sm:%s1884_s28] %v236_v38 }
 0x109   : > { %239 = vst [vmem:[%s2950_s27 + $0x1a0] sm:%s1884_s28] %v238_v39 }
 0x10a PF: > { %p1885_p0 = scmp.ge.s32.totalorder %s2721_s21, 1  ;;  %p655_p1 = scmp.lt.s32.totalorder %s2721_s21, 5 }
 0x10c   : > { %p656_p2 = pnand %p1885_p0, %p655_p1 }
 0x10d   : > { %s662_s25 = sand.u32 (!%p656_p2), 1, %s2697_s15   ;;  %p704_p3 = scmp.lt.s32.totalorder (!%p656_p2), %s2709_s18, 1 }
 0x10e   : > { %659 = sbr.rel (%p656_p2) target bundleno = 762 (0x2fa), region = 90  ;;  %s1886_s10 = sshll.u32 (!%p656_p2), %s662_s25, 5 }
 0x10f   : > { %s2220_s5 = smul.u32 (!%p656_p2), 448, %s662_s25  ;;  %s3512_s29 = scalar_lea.vmem (!%p656_p2), [#allocation3], %s1886_s10  }
 0x110   : > { %p1889_p4 = scmp.ne.s32.totalorder (!%p656_p2), %s2705_s17, 0 }
 0x111   : > { %s3510_s6 = scalar_lea.vmem (!%p656_p2), [#allocation2], %s2220_s5 }
 0x113   : > { %s705_s24 = scalar_select %p704_p3, %s2709_s18, 1 }
 0x114   : > { %716 = sbr.rel (%p1889_p4) target bundleno = 284 (0x11c), region = 98 }
 0x115   : > { %s1887_s13 = sshll.u32 %s705_s24, 3 }
 0x116   : > { %s3503_s0 = scalar_lea.vmem %s3976_s3, %s1887_s13  ;;  %s3508_s8 = scalar_lea.vmem %s3977_s4, %s1887_s13 }
 0x119   : > { %vm717_vm0 = vcmask 7168   ;;  %v2853_v40 = vmov 0.0  }
 0x11a   : > { %718 = vst.msk [vmem:[%s3503_s0] sm:$0xff] %vm717_vm0, %v2853_v40 }
 0x11b   : > { %719 = vst.msk [vmem:[%s3508_s8] sm:$0xff] %vm717_vm0, %v2853_v40 }
 0x11c PF: > { %v2084_v41 = vld [vmem:[%s3510_s6 + $0x180] sm:$0xf]  ;;  %vm1053_vm1 = vcmask 1045504   ;;  %v2206_v44 = vld [vmem:[%s3510_s6 + $0x184] sm:$0xf]  ;;  %vm1049_vm2 = vcmask 883712  }
 0x11d   : > { %v2210_v42 = vld [vmem:[%s3510_s6 + $0x19c] sm:$0x30]  ;;  %v2086_v45 = vld [vmem:[%s3510_s6 + $0x1a0] sm:$0x30]  ;;  %v2092_v46 = vld [vmem:[%s3510_s6 + $0x188] sm:$0xf] }
 0x11e   : > { %v2085_v43 = vor.u32 %v2210_v42, %v2084_v41  ;;  %v2089_v47 = vor.u32 %v2206_v44, %v2086_v45  ;;  %v2211_v48 = vld [vmem:[%s3510_s6 + $0x1a4] sm:$0x30]  ;;  %v2207_v49 = vld [vmem:[%s3510_s6 + $0x18c] sm:$0xf]  ;;  %v2052_v54 = vld [vmem:[%s3510_s6 + $0x140] sm:$0xf] }
 0x11f   : > { %v2094_v50 = vld [vmem:[%s3510_s6 + $0x1a8] sm:$0x30]  ;;  %v2093_v52 = vor.u32 %v2211_v48, %v2092_v46  ;;  %v2202_v55 = vld [vmem:[%s3510_s6 + $0x15c] sm:$0xf0]  ;;  %v2198_v58 = vld [vmem:[%s3510_s6 + $0x144] sm:$0xf] }
 0x120   : > { %v1055_v51 = vsel %vm1053_vm1, %v2085_v43, 0  ;;  %v2097_v53 = vor.u32 %v2207_v49, %v2094_v50  ;;  %v1058_v56 = vsel %vm1053_vm1, %v2089_v47, 0  ;;  %v2053_v57 = vor.u32 %v2202_v55, %v2052_v54  ;;  %v2054_v59 = vld [vmem:[%s3510_s6 + $0x160] sm:$0xf0]  ;;  %v2060_v63 = vld [vmem:[%s3510_s6 + $0x148] sm:$0xf] }
 0x121   : > { %1079 = vmatpush.bf16.msra.mxu0 %v1055_v51  ;;  %1092 = vmatpush.bf16.msra.mxu1 %v1058_v56  ;;  %v1061_v60 = vsel %vm1053_vm1, %v2093_v52, 0  ;;  %v2057_v62 = vor.u32 %v2198_v58, %v2054_v59  ;;  %v2203_v0 = vld [vmem:[%s3510_s6 + $0x164] sm:$0xf0]  ;;  %v2199_v2 = vld [vmem:[%s3510_s6 + $0x14c] sm:$0xf]  ;;  %s2122_s7 = sshll.u32 %s2705_s17, 10 }
 0x122   : > { %v1064_v61 = vsel %vm1053_vm1, %v2097_v53, 0  ;;  %1105 = vmatpush.bf16.msra.mxu2 %v1061_v60  ;;  %v2061_v1 = vor.u32 %v2203_v0, %v2060_v63  ;;  %v2062_v3 = vld [vmem:[%s3510_s6 + $0x168] sm:$0xf0]  ;;  %v2020_v4 = vld [vmem:[%s3510_s6 + $0x100] sm:$0xf]  ;;  %vm1244_vm11 = vcmask 7168  }
 0x123   : > { %1118 = vmatpush.bf16.msra.mxu3 %v1064_v61  ;;  %v2065_v5 = vor.u32 %v2199_v2, %v2062_v3  ;;  %v2194_v6 = vld [vmem:[%s3510_s6 + $0x11c] sm:$0xf0]  ;;  %v2190_v7 = vld [vmem:[%s3510_s6 + $0x104] sm:$0xf]  ;;  %v2028_v10 = vld [vmem:[%s3510_s6 + $0x108] sm:$0xf] }
 0x124   : > { %v2022_v8 = vld [vmem:[%s3510_s6 + $0x120] sm:$0xf0]  ;;  %v2021_v9 = vor.u32 %v2194_v6, %v2020_v4  ;;  %v2195_v11 = vld [vmem:[%s3510_s6 + $0x124] sm:$0xf0]  ;;  %v2191_v12 = vld [vmem:[%s3510_s6 + $0x10c] sm:$0xf] }
 0x125   : > { %1080 = vmatpush.bf16.msra.mxu0 %v2053_v57  ;;  %1093 = vmatpush.bf16.msra.mxu1 %v2057_v62  ;;  %v2025_v13 = vor.u32 %v2190_v7, %v2022_v8  ;;  %v2030_v14 = vld [vmem:[%s3510_s6 + $0x128] sm:$0xf0]  ;;  %v1988_v15 = vld [vmem:[%s3510_s6 + $0xc0] sm:$0xf]  ;;  %v2029_v17 = vor.u32 %v2195_v11, %v2028_v10  ;;  %v2182_v19 = vld [vmem:[%s3510_s6 + $0xc4] sm:$0xf] }
 0x126   : > { %v2186_v16 = vld [vmem:[%s3510_s6 + $0xdc] sm:$0xf0]  ;;  %1106 = vmatpush.bf16.msra.mxu2 %v2061_v1  ;;  %v2033_v18 = vor.u32 %v2191_v12, %v2030_v14  ;;  %v1990_v20 = vld [vmem:[%s3510_s6 + $0xe0] sm:$0xf0]  ;;  %v1996_v21 = vld [vmem:[%s3510_s6 + $0xc8] sm:$0xf] }
 0x127   : > { %1119 = vmatpush.bf16.msra.mxu3 %v2065_v5  ;;  %v2187_v22 = vld [vmem:[%s3510_s6 + $0xe4] sm:$0xf0]  ;;  %v2183_v23 = vld [vmem:[%s3510_s6 + $0xcc] sm:$0xf]  ;;  %v1989_v25 = vor.u32 %v2186_v16, %v1988_v15  ;;  %v1993_v26 = vor.u32 %v2182_v19, %v1990_v20  ;;  %v1956_v27 = vld [vmem:[%s3510_s6 + $0x80] sm:$0xf] }
 0x128   : > { %v1998_v24 = vld [vmem:[%s3510_s6 + $0xe8] sm:$0xf0]  ;;  %v2178_v28 = vld [vmem:[%s3510_s6 + $0x9c] sm:$0xf0]  ;;  %v1997_v29 = vor.u32 %v2187_v22, %v1996_v21  ;;  %v2174_v31 = vld [vmem:[%s3510_s6 + $0x84] sm:$0xf] }
 0x129   : > { %1081 = vmatpush.bf16.msra.mxu0 %v2021_v9  ;;  %1094 = vmatpush.bf16.msra.mxu1 %v2025_v13  ;;  %v2001_v30 = vor.u32 %v2183_v23, %v1998_v24  ;;  %v1958_v32 = vld [vmem:[%s3510_s6 + $0xa0] sm:$0xf0]  ;;  %v1964_v33 = vld [vmem:[%s3510_s6 + $0x88] sm:$0xf]  ;;  %v2175_v35 = vld [vmem:[%s3510_s6 + $0x8c] sm:$0xf]  ;;  %v1957_v37 = vor.u32 %v2178_v28, %v1956_v27 }
 0x12a   : > { %1107 = vmatpush.bf16.msra.mxu2 %v2029_v17  ;;  %v2179_v34 = vld [vmem:[%s3510_s6 + $0xa4] sm:$0xf0]  ;;  %v1966_v36 = vld [vmem:[%s3510_s6 + $0xa8] sm:$0xf0]  ;;  %v1924_v38 = vld [vmem:[%s3510_s6 + $0x40] sm:$0xf]  ;;  %v1961_v39 = vor.u32 %v2174_v31, %v1958_v32 }
 0x12b   : > { %1120 = vmatpush.bf16.msra.mxu3 %v2033_v18  ;;  %v2170_v40 = vld [vmem:[%s3510_s6 + $0x5c] sm:$0xf0]  ;;  %v2166_v41 = vld [vmem:[%s3510_s6 + $0x44] sm:$0xf]  ;;  %v1965_v43 = vor.u32 %v2179_v34, %v1964_v33  ;;  %v1969_v44 = vor.u32 %v2175_v35, %v1966_v36  ;;  %v1932_v45 = vld [vmem:[%s3510_s6 + $0x48] sm:$0xf] }
 0x12c   : > { %v1926_v42 = vld [vmem:[%s3510_s6 + $0x60] sm:$0xf0]  ;;  %v2171_v46 = vld [vmem:[%s3510_s6 + $0x64] sm:$0xf0]  ;;  %v2167_v47 = vld [vmem:[%s3510_s6 + $0x4c] sm:$0xf]  ;;  %v1925_v51 = vor.u32 %v2170_v40, %v1924_v38 }
 0x12d   : > { %1082 = vmatpush.bf16.msra.mxu0 %v1989_v25  ;;  %1095 = vmatpush.bf16.msra.mxu1 %v1993_v26  ;;  %v1934_v48 = vld [vmem:[%s3510_s6 + $0x68] sm:$0xf0]  ;;  %v1892_v49 = vld [vmem:[%s3510_s6] sm:$0xf]  ;;  %v2158_v52 = vld [vmem:[%s3510_s6 + $0x4] sm:$0xf]  ;;  %v1929_v57 = vor.u32 %v2166_v41, %v1926_v42  ;;  %v1933_v61 = vor.u32 %v2171_v46, %v1932_v45 }
 0x12e   : > { %1108 = vmatpush.bf16.msra.mxu2 %v1997_v29  ;;  %v2162_v50 = vld [vmem:[%s3510_s6 + $0x1c] sm:$0xf0]  ;;  %v1894_v53 = vld [vmem:[%s3510_s6 + $0x20] sm:$0xf0]  ;;  %v2100_v54 = vld [vmem:[%s3510_s6 + $0x190] sm:$0xf]  ;;  %v1937_v62 = vor.u32 %v2167_v47, %v1934_v48 }
 0x12f   : > { %1121 = vmatpush.bf16.msra.mxu3 %v2001_v30  ;;  %v2212_v55 = vld [vmem:[%s3510_s6 + $0x1ac] sm:$0x30]  ;;  %v2208_v56 = vld [vmem:[%s3510_s6 + $0x194] sm:$0xf]  ;;  %v2108_v59 = vld [vmem:[%s3510_s6 + $0x198] sm:$0xf]  ;;  %v1893_v8 = vor.u32 %v2162_v50, %v1892_v49  ;;  %v1897_v9 = vor.u32 %v2158_v52, %v1894_v53 }
 0x130   : > { %v2102_v58 = vld [vmem:[%s3510_s6 + $0x1b0] sm:$0x30]  ;;  %v2213_v60 = vld [vmem:[%s3510_s6 + $0x1b4] sm:$0x30]  ;;  %v1900_v63 = vld [vmem:[%s3510_s6 + $0x8] sm:$0xf]  ;;  %v2101_v0 = vor.u32 %v2212_v55, %v2100_v54 }
 0x131   : > { %1083 = vmatpush.bf16.msra.mxu0 %v1957_v37  ;;  %1096 = vmatpush.bf16.msra.mxu1 %v1961_v39  ;;  %v2209_v1 = vld [vmem:[%s3510_s6 + $0x19c] sm:$0xf]  ;;  %v2163_v3 = vld [vmem:[%s3510_s6 + $0x24] sm:$0xf0]  ;;  %v2159_v4 = vld [vmem:[%s3510_s6 + $0xc] sm:$0xf]  ;;  %v2105_v6 = vor.u32 %v2208_v56, %v2102_v58  ;;  %v2109_v7 = vor.u32 %v2213_v60, %v2108_v59 }
 0x132   : > { %1109 = vmatpush.bf16.msra.mxu2 %v1965_v43  ;;  %v2110_v2 = vld [vmem:[%s3510_s6 + $0x1b8] sm:$0x30]  ;;  %v1902_v5 = vld [vmem:[%s3510_s6 + $0x28] sm:$0xf0]  ;;  %v1901_v11 = vor.u32 %v2163_v3, %v1900_v63  ;;  %v1067_v13 = vsel %vm1053_vm1, %v2101_v0, 0  ;;  %s2124_s14 = sshll.u32 (%p2929_p6), %s2705_s17, 3 }
 0x133   : > { %1122 = vmatpush.bf16.msra.mxu3 %v1969_v44  ;;  %v2113_v10 = vor.u32 %v2209_v1, %v2110_v2  ;;  %v1905_v12 = vor.u32 %v2159_v4, %v1902_v5  ;;  %v2068_v14 = vld [vmem:[%s3510_s6 + $0x150] sm:$0xf]  ;;  %v1070_v15 = vsel %vm1053_vm1, %v2105_v6, 0  ;;  %v1073_v16 = vsel %vm1053_vm1, %v2109_v7, 0  ;;  %v2200_v18 = vld [vmem:[%s3510_s6 + $0x154] sm:$0xf] }
 0x134   : > { %v2204_v17 = vld [vmem:[%s3510_s6 + $0x16c] sm:$0xf0]  ;;  %v2070_v19 = vld [vmem:[%s3510_s6 + $0x170] sm:$0xf0]  ;;  %v2076_v20 = vld [vmem:[%s3510_s6 + $0x158] sm:$0xf] }
 0x135   : > { %1084 = vmatpush.bf16.msra.mxu0 %v1925_v51  ;;  %1097 = vmatpush.bf16.msra.mxu1 %v1929_v57  ;;  %v2205_v21 = vld [vmem:[%s3510_s6 + $0x174] sm:$0xf0]  ;;  %v1076_v22 = vsel %vm1053_vm1, %v2113_v10, 0  ;;  %v2201_v23 = vld [vmem:[%s3510_s6 + $0x15c] sm:$0xf]  ;;  %v2069_v26 = vor.u32 %v2204_v17, %v2068_v14  ;;  %v2073_v27 = vor.u32 %v2200_v18, %v2070_v19  ;;  %s2221_s20 = smul.u32 (%p2929_p6), 10, %s2709_s18 }
 0x136   : > { %1110 = vmatpush.bf16.msra.mxu2 %v1933_v61  ;;  %v2078_v24 = vld [vmem:[%s3510_s6 + $0x178] sm:$0xf0]  ;;  %v3600_v25 = vld [vmem:[%s3974_s1] sm:$0xf]  ;;  %v2077_v28 = vor.u32 %v2205_v21, %v2076_v20  ;;  %v2036_v29 = vld [vmem:[%s3510_s6 + $0x110] sm:$0xf] }
 0x137   : > { %1123 = vmatpush.bf16.msra.mxu3 %v1937_v62  ;;  %v2196_v30 = vld [vmem:[%s3510_s6 + $0x12c] sm:$0xf0]  ;;  %v2192_v31 = vld [vmem:[%s3510_s6 + $0x114] sm:$0xf]  ;;  %v2081_v32 = vor.u32 %v2201_v23, %v2078_v24  ;;  %v2044_v34 = vld [vmem:[%s3510_s6 + $0x118] sm:$0xf]  ;;  %s1288_s28 = sadd.s32 (%p2929_p6), %s2221_s20, %s2124_s14 }
 0x138   : > { %v2038_v33 = vld [vmem:[%s3510_s6 + $0x130] sm:$0xf0]  ;;  %v2197_v35 = vld [vmem:[%s3510_s6 + $0x134] sm:$0xf0]  ;;  %v2193_v36 = vld [vmem:[%s3510_s6 + $0x11c] sm:$0xf]  ;;  %v2037_v38 = vor.u32 %v2196_v30, %v2036_v29 }
 0x139   : > { %1085 = vmatpush.bf16.msra.mxu0 %v1893_v8  ;;  %1098 = vmatpush.bf16.msra.mxu1 %v1897_v9  ;;  %v2046_v37 = vld [vmem:[%s3510_s6 + $0x138] sm:$0xf0]  ;;  %v2041_v39 = vor.u32 %v2192_v31, %v2038_v33  ;;  %v2045_v40 = vor.u32 %v2197_v35, %v2044_v34  ;;  %v2004_v41 = vld [vmem:[%s3510_s6 + $0xd0] sm:$0xf]  ;;  %v2184_v43 = vld [vmem:[%s3510_s6 + $0xd4] sm:$0xf] }
 0x13a   : > { %1111 = vmatpush.bf16.msra.mxu2 %v1901_v11  ;;  %v2188_v42 = vld [vmem:[%s3510_s6 + $0xec] sm:$0xf0]  ;;  %v2049_v44 = vor.u32 %v2193_v36, %v2046_v37  ;;  %v2006_v45 = vld [vmem:[%s3510_s6 + $0xf0] sm:$0xf0]  ;;  %v2012_v46 = vld [vmem:[%s3510_s6 + $0xd8] sm:$0xf]  ;;  %v1208_v37 = vstv %s2122_s7 }
 0x13b   : > { %1124 = vmatpush.bf16.msra.mxu3 %v1905_v12  ;;  %v2189_v47 = vld [vmem:[%s3510_s6 + $0xf4] sm:$0xf0]  ;;  %v2185_v48 = vld [vmem:[%s3510_s6 + $0xdc] sm:$0xf]  ;;  %v2005_v50 = vor.u32 %v2188_v42, %v2004_v41  ;;  %v2009_v51 = vor.u32 %v2184_v43, %v2006_v45  ;;  %v1972_v53 = vld [vmem:[%s3510_s6 + $0x90] sm:$0xf] }
 0x13c   : > { %2114 = vmatmul.msk.bf16.vlgmr.msra.gmra.mxu0 %vm1049_vm2, %v3600_v25  ;;  %2115 = vmatmul.msk.bf16.vlgmr.msra.gmra.mxu1 %vm1049_vm2, %v3600_v25  ;;  %v2014_v49 = vld [vmem:[%s3510_s6 + $0xf8] sm:$0xf0]  ;;  %v2013_v52 = vor.u32 %v2189_v47, %v2012_v46  ;;  %v2180_v54 = vld [vmem:[%s3510_s6 + $0xac] sm:$0xf0]  ;;  %v2176_v55 = vld [vmem:[%s3510_s6 + $0x94] sm:$0xf] }
 0x13d   : > { %1131 = vmatpush.bf16.msrb.mxu0 %v1067_v13  ;;  %1144 = vmatpush.bf16.msrb.mxu1 %v1070_v15  ;;  %v2017_v56 = vor.u32 %v2185_v48, %v2014_v49  ;;  %v1974_v57 = vld [vmem:[%s3510_s6 + $0xb0] sm:$0xf0]  ;;  %v1980_v58 = vld [vmem:[%s3510_s6 + $0x98] sm:$0xf]  ;;  %v2177_v60 = vld [vmem:[%s3510_s6 + $0x9c] sm:$0xf]  ;;  %v1973_v62 = vor.u32 %v2180_v54, %v1972_v53 }
 0x13e   : > { %1157 = vmatpush.bf16.msrb.mxu2 %v1073_v16  ;;  %2117 = vmatmul.msk.bf16.vlgmr.msra.gmra.mxu3 %vm1049_vm2, %v3600_v25  ;;  %v2181_v59 = vld [vmem:[%s3510_s6 + $0xb4] sm:$0xf0]  ;;  %v1982_v61 = vld [vmem:[%s3510_s6 + $0xb8] sm:$0xf0]  ;;  %v1977_v63 = vor.u32 %v2176_v55, %v1974_v57  ;;  %v1940_v1 = vld [vmem:[%s3510_s6 + $0x50] sm:$0xf] }
 0x13f   : > { %1170 = vmatpush.bf16.msrb.mxu3 %v1076_v22  ;;  %2116 = vmatmul.msk.bf16.vlgmr.msra.gmra.mxu2 %vm1049_vm2, %v3600_v25  ;;  %v1981_v0 = vor.u32 %v2181_v59, %v1980_v58  ;;  %v2172_v2 = vld [vmem:[%s3510_s6 + $0x6c] sm:$0xf0]  ;;  %v2168_v3 = vld [vmem:[%s3510_s6 + $0x54] sm:$0xf]  ;;  %v1985_v4 = vor.u32 %v2177_v60, %v1982_v61  ;;  %v1948_v6 = vld [vmem:[%s3510_s6 + $0x58] sm:$0xf] }
 0x140   : > { %v1942_v5 = vld [vmem:[%s3510_s6 + $0x70] sm:$0xf0]  ;;  %v2173_v7 = vld [vmem:[%s3510_s6 + $0x74] sm:$0xf0]  ;;  %v2169_v8 = vld [vmem:[%s3510_s6 + $0x5c] sm:$0xf]  ;;  %v1941_v10 = vor.u32 %v2172_v2, %v1940_v1 }
 0x141   : > { %1132 = vmatpush.bf16.msrb.mxu0 %v2069_v26  ;;  %1145 = vmatpush.bf16.msrb.mxu1 %v2073_v27  ;;  %v1950_v9 = vld [vmem:[%s3510_s6 + $0x78] sm:$0xf0]  ;;  %v1945_v11 = vor.u32 %v2168_v3, %v1942_v5  ;;  %v1949_v12 = vor.u32 %v2173_v7, %v1948_v6  ;;  %v1908_v13 = vld [vmem:[%s3510_s6 + $0x10] sm:$0xf]  ;;  %v2160_v15 = vld [vmem:[%s3510_s6 + $0x14] sm:$0xf] }
 0x142   : > { %1158 = vmatpush.bf16.msrb.mxu2 %v2077_v28  ;;  %v2164_v14 = vld [vmem:[%s3510_s6 + $0x2c] sm:$0xf0]  ;;  %v1953_v16 = vor.u32 %v2169_v8, %v1950_v9  ;;  %v1910_v17 = vld [vmem:[%s3510_s6 + $0x30] sm:$0xf0]  ;;  %v1916_v18 = vld [vmem:[%s3510_s6 + $0x18] sm:$0xf]  ;;  %v1198_v28 = vlaneseq }
 0x143   : > { %1171 = vmatpush.bf16.msrb.mxu3 %v2081_v32  ;;  %v2165_v19 = vld [vmem:[%s3510_s6 + $0x34] sm:$0xf0]  ;;  %v2161_v20 = vld [vmem:[%s3510_s6 + $0x1c] sm:$0xf]  ;;  %v1909_v22 = vor.u32 %v2164_v14, %v1908_v13  ;;  %v1913_v23 = vor.u32 %v2160_v15, %v1910_v17  ;;  %s1282_s22 = ssub.s32 (%p2929_p6), 10, %s2124_s14  ;;  %s2127_s25 = sshll.u32 (%p2929_p6), %s1288_s28, 2 }
 0x144   : > { %v1918_v21 = vld [vmem:[%s3510_s6 + $0x38] sm:$0xf0]  ;;  %v1917_v24 = vor.u32 %v2165_v19, %v1916_v18  ;;  %v1199_v31 = vand.u32 127, %v1198_v28  ;;  %p1283_p5 = scmp.lt.s32.totalorder (%p2929_p6), %s1282_s22, 8  ;;  %s3674_s24 = scalar_lea.vmem (%p2929_p6), %s3975_s2, %s2127_s25  }
 0x145   : > { %1133 = vmatpush.bf16.msrb.mxu0 %v2037_v38  ;;  %1146 = vmatpush.bf16.msrb.mxu1 %v2041_v39  ;;  %v1921_v26 = vor.u32 %v2161_v20, %v1918_v21 }
 0x146   : > { %1159 = vmatpush.bf16.msrb.mxu2 %v2045_v40  ;;  %v1200_v36 = vadd.s32 128, %v1199_v31  ;;  %v1209_v39 = vadd.s32 %v1208_v37, %v1199_v31  ;;  %v1201_v41 = vadd.s32 256, %v1199_v31  ;;  %v1202_v45 = vadd.s32 384, %v1199_v31 }
 0x147   : > { %1172 = vmatpush.bf16.msrb.mxu3 %v2049_v44  ;;  %v1204_v53 = vadd.s32 640, %v1199_v31  ;;  %v1206_v5 = vadd.s32 896, %v1199_v31 }
 0x148   : > { %v1210_v40 = vadd.s32 %v1208_v37, %v1200_v36  ;;  %vm1217_vm3 = vcmp.lt.s32.totalorder %v1209_v39, 1176  ;;  %v1211_v46 = vadd.s32 %v1208_v37, %v1201_v41  ;;  %v1233_v39 = vld [vmem:[%s3503_s0] sm:$0xff] }
 0x149   : > { %1134 = vmatpush.bf16.msrb.mxu0 %v2005_v50  ;;  %1147 = vmatpush.bf16.msrb.mxu1 %v2009_v51  ;;  %v1203_v50 = vadd.s32 512, %v1199_v31  ;;  %v1212_v51 = vadd.s32 %v1208_v37, %v1202_v45  ;;  %v1216_v15 = vadd.s32 %v1208_v37, %v1206_v5 }
 0x14a   : > { %1160 = vmatpush.bf16.msrb.mxu2 %v2013_v52  ;;  %vm1218_vm4 = vcmp.lt.s32.totalorder %v1210_v40, 1176  ;;  %vm1219_vm5 = vcmp.lt.s32.totalorder %v1211_v46, 1176 }
 0x14b   : > { %1173 = vmatpush.bf16.msrb.mxu3 %v2017_v56  ;;  %v1213_v56 = vadd.s32 %v1208_v37, %v1203_v50  ;;  %vm1220_vm6 = vcmp.lt.s32.totalorder %v1212_v51, 1176  ;;  %vm1224_vm10 = vcmp.lt.s32.totalorder %v1216_v15, 1176 }
 0x14d   : > { %1135 = vmatpush.bf16.msrb.mxu0 %v1973_v62  ;;  %1148 = vmatpush.bf16.msrb.mxu1 %v1977_v63  ;;  %v1205_v63 = vadd.s32 768, %v1199_v31  ;;  %vm1221_vm7 = vcmp.lt.s32.totalorder %v1213_v56, 1176 }
 0x14e   : > { %1161 = vmatpush.bf16.msrb.mxu2 %v1981_v0  ;;  %v1214_v0 = vadd.s32 %v1208_v37, %v1204_v53 }
 0x14f   : > { %1174 = vmatpush.bf16.msrb.mxu3 %v1985_v4  ;;  %v1215_v7 = vadd.s32 %v1208_v37, %v1205_v63 }
 0x150   : > { %vm1222_vm8 = vcmp.lt.s32.totalorder %v1214_v0, 1176 }
 0x151   : > { %1136 = vmatpush.bf16.msrb.mxu0 %v1941_v10  ;;  %1149 = vmatpush.bf16.msrb.mxu1 %v1945_v11  ;;  %vm1223_vm9 = vcmp.lt.s32.totalorder %v1215_v7, 1176 }
 0x152   : > { %1162 = vmatpush.bf16.msrb.mxu2 %v1949_v12 }
 0x153   : > { %1175 = vmatpush.bf16.msrb.mxu3 %v1953_v16 }
 0x155   : > { %1137 = vmatpush.bf16.msrb.mxu0 %v1909_v22  ;;  %1150 = vmatpush.bf16.msrb.mxu1 %v1913_v23 }
 0x156   : > { %1163 = vmatpush.bf16.msrb.mxu2 %v1917_v24 }
 0x157   : > { %1176 = vmatpush.bf16.msrb.mxu3 %v1921_v26 }
 0x158   : > { %2118 = vmatmul.msk.bf16.vlgmr.msrb.gmra.mxu0 %vm1049_vm2, %v3600_v25  ;;  %2119 = vmatmul.msk.bf16.vlgmr.msrb.gmra.mxu1 %vm1049_vm2, %v3600_v25 }
 0x159   : > { %2120 = vmatmul.msk.bf16.vlgmr.msrb.gmra.mxu2 %vm1049_vm2, %v3600_v25 }
 0x15a   : > { %2121 = vmatmul.msk.bf16.vlgmr.msrb.gmra.mxu3 %vm1049_vm2, %v3600_v25 }
 0x1b9   : > { %v1087_v27 = vpop.f32.mrf.mxu0  ;;  %v1100_v29 = vpop.f32.mrf.mxu1 }
 0x1ba   : > { %v1182_v30 = vpack.c.bf16 %v1100_v29, %v1087_v27 }
 0x1bc   : > { %1186 = vst [vmem:[%s3512_s29] sm:$0xff] %v1182_v30  ;;  %v1190_v43 = vunpack.c.l.bf16 %v1182_v30  ;;  %v1191_v44 = vunpack.c.h.bf16 %v1182_v30 }
 0x1be   : > { %v1225_v47 = vsel %vm1217_vm3, %v1190_v43, 0.0  ;;  %v1226_v48 = vsel %vm1218_vm4, %v1191_v44, 0.0 }
 0x1bf   : > { %v1234_v52 = vadd.f32 %v1226_v48, %v1225_v47  ;;  %v1247_v57 = vmul.f32 %v1225_v47, %v1225_v47  ;;  %v1248_v58 = vmul.f32 %v1226_v48, %v1226_v48 }
 0x1c1   : > { %v1126_v33 = vpop.f32.mrf.mxu3  ;;  %v1089_v35 = vpop.f32.mrf.mxu0  ;;  %v1255_v2 = vadd.f32 %v1248_v58, %v1247_v57 }
 0x1c2   : > { %v1113_v32 = vpop.f32.mrf.mxu2  ;;  %v1102_v38 = vpop.f32.mrf.mxu1 }
 0x1c3   : > { %v1183_v34 = vpack.c.bf16 %v1126_v33, %v1113_v32 }
 0x1c5   : > { %1187 = vst [vmem:[%s3512_s29 + $0x8] sm:$0xff] %v1183_v34  ;;  %v1192_v49 = vunpack.c.l.bf16 %v1183_v34  ;;  %v1193_v54 = vunpack.c.h.bf16 %v1183_v34 }
 0x1c7   : > { %v1227_v55 = vsel %vm1219_vm5, %v1192_v49, 0.0  ;;  %v1228_v1 = vsel %vm1220_vm6, %v1193_v54, 0.0 }
 0x1c8   : > { %v1235_v61 = vadd.f32 %v1234_v52, %v1227_v55  ;;  %v1249_v3 = vmul.f32 %v1227_v55, %v1227_v55  ;;  %v1250_v11 = vmul.f32 %v1228_v1, %v1228_v1 }
 0x1c9   : > { %v1128_v25 = vpop.f32.mrf.mxu3 }
 0x1ca   : > { %v1115_v42 = vpop.f32.mrf.mxu2  ;;  %v1236_v9 = vadd.f32 %v1235_v61, %v1228_v1  ;;  %v1256_v12 = vadd.f32 %v1255_v2, %v1249_v3 }
 0x1cb   : > { %v1246_v42 = vld [vmem:[%s3508_s8] sm:$0xff] }
 0x1cc   : > { %v1257_v24 = vadd.f32 %v1256_v12, %v1250_v11 }
 0x1d5   : > { %v1139_v59 = vpop.f32.mrf.mxu0  ;;  %v1152_v60 = vpop.f32.mrf.mxu1 }
 0x1d6   : > { %v1184_v62 = vpack.c.bf16 %v1152_v60, %v1139_v59 }
 0x1d8   : > { %1188 = vst [vmem:[%s3512_s29 + $0x10] sm:$0xff] %v1184_v62  ;;  %v1194_v4 = vunpack.c.l.bf16 %v1184_v62  ;;  %v1195_v6 = vunpack.c.h.bf16 %v1184_v62 }
 0x1da   : > { %v1229_v8 = vsel %vm1221_vm7, %v1194_v4, 0.0  ;;  %v1230_v19 = vsel %vm1222_vm8, %v1195_v6, 0.0 }
 0x1db   : > { %v1237_v16 = vadd.f32 %v1236_v9, %v1229_v8  ;;  %v1251_v20 = vmul.f32 %v1229_v8, %v1229_v8  ;;  %v1252_v28 = vmul.f32 %v1230_v19, %v1230_v19 }
 0x1dc   : > { %v1165_v10 = vpop.f32.mrf.mxu2 }
 0x1dd   : > { %v1178_v13 = vpop.f32.mrf.mxu3  ;;  %v1141_v14 = vpop.f32.mrf.mxu0  ;;  %v1238_v23 = vadd.f32 %v1237_v16, %v1230_v19  ;;  %v1258_v29 = vadd.f32 %v1257_v24, %v1251_v20 }
 0x1de   : > { %v1185_v17 = vpack.c.bf16 %v1178_v13, %v1165_v10  ;;  %v1154_v18 = vpop.f32.mrf.mxu1 }
 0x1df   : > { %v1259_v35 = vadd.f32 %v1258_v29, %v1252_v28 }
 0x1e0   : > { %1189 = vst [vmem:[%s3512_s29 + $0x18] sm:$0xff] %v1185_v17  ;;  %v1196_v21 = vunpack.c.l.bf16 %v1185_v17  ;;  %v1197_v22 = vunpack.c.h.bf16 %v1185_v17 }
 0x1e2   : > { %v1231_v26 = vsel %vm1223_vm9, %v1196_v21, 0.0  ;;  %v1232_v31 = vsel %vm1224_vm10, %v1197_v22, 0.0 }
 0x1e3   : > { %v1239_v27 = vadd.f32 %v1238_v23, %v1231_v26  ;;  %v1253_v34 = vmul.f32 %v1231_v26, %v1231_v26  ;;  %v1254_v37 = vmul.f32 %v1232_v31, %v1232_v31 }
 0x1e4   : > { %v1167_v30 = vpop.f32.mrf.mxu2 }
 0x1e5   : > { %v1180_v32 = vpop.f32.mrf.mxu3  ;;  %v1240_v33 = vadd.f32 %v1239_v27, %v1232_v31  ;;  %v1260_v36 = vadd.f32 %v1259_v35, %v1253_v34 }
 0x1e7   : > { %1241 = vadd.xlane.f32.xlu0 %v1240_v33  ;;  %v1261_v38 = vadd.f32 %v1260_v36, %v1254_v37 }
 0x1ef   : > { %1262 = vadd.xlane.f32.xlu0 %v1261_v38 }
 0x25a   : > { %v1242_v40 = vpop.xlane.xlu0 %1241 }
 0x25b   : > { %v1243_v41 = vadd.f32 %v1242_v40, %v1233_v39 }
 0x25d   : > { %1245 = vst.msk [vmem:[%s3503_s0] sm:$0xff] %vm1244_vm11, %v1243_v41 }
 0x261   : > { %1280 = sbr.rel (!%p2929_p6) target bundleno = 762 (0x2fa), region = 102 }
 0x262   : > { %v1263_v25 = vpop.xlane.xlu0 %1262 }
 0x263   : > { %v1264_v43 = vadd.f32 %v1263_v25, %v1246_v42 }
 0x265   : > { %1265 = vst.msk [vmem:[%s3508_s8] sm:$0xff] %vm1244_vm11, %v1264_v43 }
 0x266   : > { %s4041_s22 = smov (!%p1283_p5, %s1282_s22), 8 }
 0x267   : > { %s3676_s13 = sshll.u32 %s4041_s22, 2 }
 0x268   : > { %p2129_p7 = scmp.eq.s32.totalorder %s3676_s13, 0 }
 0x269   : > { %p1295_p6 = scmp.lt.u32.totalorder (!%p2129_p7), %s3676_s13, 8 }
 0x26a   : > { %1294 = sbr.rel (%p2129_p7) target bundleno = 762 (0x2fa), region = 106 }
 0x26f   : > { %1298 = sbr.rel (%p1295_p6) target bundleno = 753 (0x2f1), region = 110  ;;  %s3681_s17 = sand.u32 (!%p1295_p6), 7, %s3676_s13  }
 0x270   : > { %p1315_p8 = scmp.eq.s32.totalorder (!%p1295_p6), %s3681_s17, 0  ;;  %p2130_p9 = scmp.ne.s32.totalorder (!%p1295_p6), %s3681_s17, 0 }
 0x274   : > { %1318 = sbr.rel (%p2130_p9) target bundleno = 688 (0x2b0), region = 125  ;;  %s1319_s18 = sshrl.u32 (!%p2130_p9), %s3676_s13, 3 }
 0x275   : > { %s3688_s26 = sshrl.u32 (!%p2130_p9), %s1319_s18, 5 }
 0x276   : > { %p2131_p10 = scmp.le.s32.totalorder (!%p2130_p9), %s3688_s26, 0 }
 0x279   : > { %1753 = sbr.rel (%p2131_p10) target bundleno = 671 (0x29f), region = 297  ;;  %s4007_s27 = smov (!%p2131_p10), %s3674_s24 }
 0x27a   : > { %s4008_s9 = smov (!%p2131_p10), %s3512_s29  ;;  %s3697_s0 = smov (!%p2131_p10), 0  }
 0x27b   : > { %s3699_s23 = smov (!%p2131_p10), 0  }
 0x27e LB: >> { %v1330_v44 = vld [vmem:[%s2793_s9] sm:$0xff]  ;;  %v1332_v45 = vld [vmem:[%s2793_s9 + $0x8] sm:$0xff]  ;;  %v1334_v46 = vld [vmem:[%s2793_s9 + $0x10] sm:$0xff]  ;;  %s1394_s11 = sadd.s32 1, %s2797_s0  ;;  %s1324_s23 = sadd.s32 1, %s2801_s23   ;;  %s2801_s23 = sphi %s3699_s23, %s1324_s23   ;;  %s2797_s0 = sphi %s3697_s0, %s4011_s0   ;;  %s2793_s9 = sphi %s4008_s9, %s4010_s9   ;;  %s2789_s27 = sphi %s4007_s27, %s4009_s27  }
 0x27f   : >> { %1331 = vst [vmem:[%s2789_s27] sm:$0xff] %v1330_v44  ;;  %v1336_v47 = vld [vmem:[%s2793_s9 + $0x18] sm:$0xff]  ;;  %p1395_p11 = scmp.ge.s32.totalorder %s1394_s11, %s3688_s26  ;;  %v1338_v48 = vld [vmem:[%s2793_s9 + $0x20] sm:$0xff]  ;;  %v1340_v49 = vld [vmem:[%s2793_s9 + $0x28] sm:$0xff]  ;;  %p1323_p12 = scmp.ge.s32.totalorder %s1324_s23, %s3688_s26 }
 0x280   : >> { %1333 = vst [vmem:[%s2789_s27 + $0x8] sm:$0xff] %v1332_v45  ;;  %v1342_v50 = vld [vmem:[%s2793_s9 + $0x30] sm:$0xff]  ;;  %v1344_v51 = vld [vmem:[%s2793_s9 + $0x38] sm:$0xff]  ;;  %v1346_v52 = vld [vmem:[%s2793_s9 + $0x40] sm:$0xff] }
 0x281   : >> { %1335 = vst [vmem:[%s2789_s27 + $0x10] sm:$0xff] %v1334_v46  ;;  %s4043_s11 = smov (%p1395_p11, %s1394_s11), 0  ;;  %v1348_v53 = vld [vmem:[%s2793_s9 + $0x48] sm:$0xff]  ;;  %v1350_v54 = vld [vmem:[%s2793_s9 + $0x50] sm:$0xff]  ;;  %v1352_v55 = vld [vmem:[%s2793_s9 + $0x58] sm:$0xff] }
 0x282   : >> { %1337 = vst [vmem:[%s2789_s27 + $0x18] sm:$0xff] %v1336_v47  ;;  %s2132_s8 = sshll.u32 %s4043_s11, 8  ;;  %v1354_v56 = vld [vmem:[%s2793_s9 + $0x60] sm:$0xff]  ;;  %v1356_v57 = vld [vmem:[%s2793_s9 + $0x68] sm:$0xff]  ;;  %v1358_v58 = vld [vmem:[%s2793_s9 + $0x70] sm:$0xff]  ;;  %s4011_s0 = smov %s4043_s11 }
 0x283   : >> { %1339 = vst [vmem:[%s2789_s27 + $0x20] sm:$0xff] %v1338_v48  ;;  %s3731_s6 = scalar_lea.vmem %s3512_s29, %s2132_s8 [#allocation3]   ;;  %s3734_s15 = scalar_lea.vmem %s3674_s24, %s2132_s8   ;;  %v1360_v59 = vld [vmem:[%s2793_s9 + $0x78] sm:$0xff]  ;;  %v1362_v60 = vld [vmem:[%s2793_s9 + $0x80] sm:$0xff]  ;;  %v1364_v61 = vld [vmem:[%s2793_s9 + $0x88] sm:$0xff] }
 0x284   : >> { %1341 = vst [vmem:[%s2789_s27 + $0x28] sm:$0xff] %v1340_v49  ;;  %v1366_v62 = vld [vmem:[%s2793_s9 + $0x90] sm:$0xff]  ;;  %v1368_v63 = vld [vmem:[%s2793_s9 + $0x98] sm:$0xff]  ;;  %v1370_v0 = vld [vmem:[%s2793_s9 + $0xa0] sm:$0xff] }
 0x285   : >> { %1343 = vst [vmem:[%s2789_s27 + $0x30] sm:$0xff] %v1342_v50  ;;  %v1372_v1 = vld [vmem:[%s2793_s9 + $0xa8] sm:$0xff]  ;;  %v1374_v2 = vld [vmem:[%s2793_s9 + $0xb0] sm:$0xff]  ;;  %v1376_v3 = vld [vmem:[%s2793_s9 + $0xb8] sm:$0xff] }
 0x286   : >> { %1345 = vst [vmem:[%s2789_s27 + $0x38] sm:$0xff] %v1344_v51  ;;  %v1378_v4 = vld [vmem:[%s2793_s9 + $0xc0] sm:$0xff]  ;;  %v1380_v5 = vld [vmem:[%s2793_s9 + $0xc8] sm:$0xff]  ;;  %v1382_v6 = vld [vmem:[%s2793_s9 + $0xd0] sm:$0xff] }
 0x287   : >> { %1347 = vst [vmem:[%s2789_s27 + $0x40] sm:$0xff] %v1346_v52  ;;  %v1384_v7 = vld [vmem:[%s2793_s9 + $0xd8] sm:$0xff]  ;;  %v1386_v8 = vld [vmem:[%s2793_s9 + $0xe0] sm:$0xff]  ;;  %v1388_v9 = vld [vmem:[%s2793_s9 + $0xe8] sm:$0xff] }
 0x288   : >> { %1349 = vst [vmem:[%s2789_s27 + $0x48] sm:$0xff] %v1348_v53  ;;  %v1390_v10 = vld [vmem:[%s2793_s9 + $0xf0] sm:$0xff]  ;;  %v1392_v11 = vld [vmem:[%s2793_s9 + $0xf8] sm:$0xff]  ;;  %s4010_s9 = smov %s3731_s6 }
 0x289   : >> { %1351 = vst [vmem:[%s2789_s27 + $0x50] sm:$0xff] %v1350_v54 }
 0x28a   : >> { %1353 = vst [vmem:[%s2789_s27 + $0x58] sm:$0xff] %v1352_v55 }
 0x28b   : >> { %1355 = vst [vmem:[%s2789_s27 + $0x60] sm:$0xff] %v1354_v56 }
 0x28c   : >> { %1357 = vst [vmem:[%s2789_s27 + $0x68] sm:$0xff] %v1356_v57 }
 0x28d   : >> { %1359 = vst [vmem:[%s2789_s27 + $0x70] sm:$0xff] %v1358_v58 }
 0x28e   : >> { %1361 = vst [vmem:[%s2789_s27 + $0x78] sm:$0xff] %v1360_v59 }
 0x28f   : >> { %1363 = vst [vmem:[%s2789_s27 + $0x80] sm:$0xff] %v1362_v60 }
 0x290   : >> { %1365 = vst [vmem:[%s2789_s27 + $0x88] sm:$0xff] %v1364_v61 }
 0x291   : >> { %1367 = vst [vmem:[%s2789_s27 + $0x90] sm:$0xff] %v1366_v62 }
 0x292   : >> { %1369 = vst [vmem:[%s2789_s27 + $0x98] sm:$0xff] %v1368_v63 }
 0x293   : >> { %1371 = vst [vmem:[%s2789_s27 + $0xa0] sm:$0xff] %v1370_v0 }
 0x294   : >> { %1373 = vst [vmem:[%s2789_s27 + $0xa8] sm:$0xff] %v1372_v1 }
 0x295   : >> { %1375 = vst [vmem:[%s2789_s27 + $0xb0] sm:$0xff] %v1374_v2 }
 0x296   : >> { %1377 = vst [vmem:[%s2789_s27 + $0xb8] sm:$0xff] %v1376_v3 }
 0x297   : >> { %1379 = vst [vmem:[%s2789_s27 + $0xc0] sm:$0xff] %v1378_v4 }
 0x298   : >> { %1381 = vst [vmem:[%s2789_s27 + $0xc8] sm:$0xff] %v1380_v5 }
 0x299   : >> { %1383 = vst [vmem:[%s2789_s27 + $0xd0] sm:$0xff] %v1382_v6 }
 0x29a   : >> { %1385 = vst [vmem:[%s2789_s27 + $0xd8] sm:$0xff] %v1384_v7  ;;  %1326 = sbr.rel (!%p1323_p12) target bundleno = 638 (0x27e), region = 303 }
 0x29b   : >> { %1387 = vst [vmem:[%s2789_s27 + $0xe0] sm:$0xff] %v1386_v8 }
 0x29c   : >> { %1389 = vst [vmem:[%s2789_s27 + $0xe8] sm:$0xff] %v1388_v9 }
 0x29d   : >> { %1391 = vst [vmem:[%s2789_s27 + $0xf0] sm:$0xff] %v1390_v10 }
 0x29e   : >> { %1393 = vst [vmem:[%s2789_s27 + $0xf8] sm:$0xff] %v1392_v11  ;;  %s4009_s27 = smov %s3734_s15 }
 0x29f PF: > { %s3800_s12 = sand.u32 31, %s1319_s18   ;;  %s2214_s7 = sshll.u32 %s3688_s26, 8 }
 0x2a0   : > { %s1405_s14 = scalar_lea.vmem %s3512_s29, %s2214_s7 [#allocation3]   ;;  %s1407_s20 = scalar_lea.vmem %s3674_s24, %s2214_s7  }
 0x2a1   : > { %p2137_p13 = scmp.le.s32.totalorder %s3800_s12, 0 }
 0x2a2   : > { %s2803_s22 = smov (!%p2137_p13), %s1407_s20   ;;  %s2807_s28 = smov (!%p2137_p13), %s1405_s14  }
 0x2a3   : > { %1767 = sbr.rel (%p2137_p13) target bundleno = 688 (0x2b0), region = 308  ;;  %s2811_s25 = smov (!%p2137_p13), 0  }
 0x2a4   : > { %s2815_s5 = smov (!%p2137_p13), 0  }
 0x2a8 LB: >> { %v1417_v12 = vld [vmem:[%s2809_s28] sm:$0xff]  ;;  %s1419_s10 = sadd.s32 1, %s2813_s25  ;;  %s1411_s5 = sadd.s32 1, %s2817_s5   ;;  %s2817_s5 = sphi %s2815_s5, %s1411_s5   ;;  %s2813_s25 = sphi %s2811_s25, %s2812_s25   ;;  %s2809_s28 = sphi %s2807_s28, %s1424_s28   ;;  %s2805_s22 = sphi %s2803_s22, %s1425_s22  }
 0x2a9   : >> { %1418 = vst [vmem:[%s2805_s22] sm:$0xff] %v1417_v12  ;;  %p1420_p0 = scmp.ge.s32.totalorder %s1419_s10, %s3800_s12  ;;  %p1410_p1 = scmp.ge.s32.totalorder %s1411_s5, %s3800_s12 }
 0x2ab   : >> { %s4045_s10 = smov (%p1420_p0, %s1419_s10), 0  ;;  %1413 = sbr.rel (!%p1410_p1) target bundleno = 680 (0x2a8), region = 314 }
 0x2ac   : >> { %s2138_s18 = sshll.u32 %s4045_s10, 3  ;;  %s2812_s25 = smov %s4045_s10  }
 0x2ad   : >> { %s1424_s28 = scalar_lea.vmem %s1405_s14, %s2138_s18 [#allocation3]   ;;  %s1425_s22 = scalar_lea.vmem %s1407_s20, %s2138_s18  }
 0x2b0 PF: > { %1428 = sbr.rel (%p1315_p8) target bundleno = 753 (0x2f1), region = 143  ;;  %s3812_s26 = ssub.s32 (!%p1315_p8), %s3676_s13, %s3681_s17 }
 0x2b1   : > { %s1434_s27 = sshrl.u32 (!%p1315_p8), %s3676_s13, 3  ;;  %s1431_s9 = scalar_lea.vmem (!%p1315_p8), %s3512_s29, %s3812_s26 [#allocation3] }
 0x2b2   : > { %s1433_s0 = scalar_lea.vmem (!%p1315_p8), %s3674_s24, %s3812_s26  ;;  %s3821_s23 = sshrl.u32 (!%p1315_p8), %s1434_s27, 5 }
 0x2b3   : > { %p2140_p2 = scmp.le.s32.totalorder (!%p1315_p8), %s3821_s23, 0 }
 0x2b5   : > { %1781 = sbr.rel (%p2140_p2) target bundleno = 731 (0x2db), region = 319  ;;  %s4012_s11 = smov (!%p2140_p2), %s3674_s24 }
 0x2b6   : > { %s4013_s8 = smov (!%p2140_p2), %s3512_s29  ;;  %s3830_s6 = smov (!%p2140_p2), 0  }
 0x2b7   : > { %s3832_s15 = smov (!%p2140_p2), 0  }
 0x2ba LB: >> { %v1445_v13 = vld [vmem:[%s2825_s8] sm:$0xff]  ;;  %v1447_v14 = vld [vmem:[%s2825_s8 + $0x8] sm:$0xff]  ;;  %v1449_v15 = vld [vmem:[%s2825_s8 + $0x10] sm:$0xff]  ;;  %s1509_s12 = sadd.s32 1, %s2829_s6  ;;  %s1439_s15 = sadd.s32 1, %s2833_s15   ;;  %s2833_s15 = sphi %s3832_s15, %s1439_s15   ;;  %s2829_s6 = sphi %s3830_s6, %s4016_s6   ;;  %s2825_s8 = sphi %s4013_s8, %s4015_s8   ;;  %s2821_s11 = sphi %s4012_s11, %s4014_s11  }
 0x2bb   : >> { %1446 = vst [vmem:[%s2821_s11] sm:$0xff] %v1445_v13  ;;  %v1451_v16 = vld [vmem:[%s2825_s8 + $0x18] sm:$0xff]  ;;  %p1510_p3 = scmp.ge.s32.totalorder %s1509_s12, %s3821_s23  ;;  %v1453_v17 = vld [vmem:[%s2825_s8 + $0x20] sm:$0xff]  ;;  %v1455_v18 = vld [vmem:[%s2825_s8 + $0x28] sm:$0xff]  ;;  %p1438_p4 = scmp.ge.s32.totalorder %s1439_s15, %s3821_s23 }
 0x2bc   : >> { %1448 = vst [vmem:[%s2821_s11 + $0x8] sm:$0xff] %v1447_v14  ;;  %v1457_v19 = vld [vmem:[%s2825_s8 + $0x30] sm:$0xff]  ;;  %v1459_v20 = vld [vmem:[%s2825_s8 + $0x38] sm:$0xff]  ;;  %v1461_v21 = vld [vmem:[%s2825_s8 + $0x40] sm:$0xff] }
 0x2bd   : >> { %1450 = vst [vmem:[%s2821_s11 + $0x10] sm:$0xff] %v1449_v15  ;;  %s4047_s12 = smov (%p1510_p3, %s1509_s12), 0  ;;  %v1463_v22 = vld [vmem:[%s2825_s8 + $0x48] sm:$0xff]  ;;  %v1465_v23 = vld [vmem:[%s2825_s8 + $0x50] sm:$0xff]  ;;  %v1467_v24 = vld [vmem:[%s2825_s8 + $0x58] sm:$0xff] }
 0x2be   : >> { %1452 = vst [vmem:[%s2821_s11 + $0x18] sm:$0xff] %v1451_v16  ;;  %s2141_s7 = sshll.u32 %s4047_s12, 8  ;;  %v1469_v26 = vld [vmem:[%s2825_s8 + $0x60] sm:$0xff]  ;;  %v1471_v27 = vld [vmem:[%s2825_s8 + $0x68] sm:$0xff]  ;;  %v1473_v28 = vld [vmem:[%s2825_s8 + $0x70] sm:$0xff]  ;;  %s4016_s6 = smov %s4047_s12 }
 0x2bf   : >> { %1454 = vst [vmem:[%s2821_s11 + $0x20] sm:$0xff] %v1453_v17  ;;  %s3864_s14 = scalar_lea.vmem %s3512_s29, %s2141_s7 [#allocation3]   ;;  %s3867_s20 = scalar_lea.vmem %s3674_s24, %s2141_s7   ;;  %v1475_v29 = vld [vmem:[%s2825_s8 + $0x78] sm:$0xff]  ;;  %v1477_v30 = vld [vmem:[%s2825_s8 + $0x80] sm:$0xff]  ;;  %v1479_v31 = vld [vmem:[%s2825_s8 + $0x88] sm:$0xff] }
 0x2c0   : >> { %1456 = vst [vmem:[%s2821_s11 + $0x28] sm:$0xff] %v1455_v18  ;;  %v1481_v32 = vld [vmem:[%s2825_s8 + $0x90] sm:$0xff]  ;;  %v1483_v33 = vld [vmem:[%s2825_s8 + $0x98] sm:$0xff]  ;;  %v1485_v34 = vld [vmem:[%s2825_s8 + $0xa0] sm:$0xff] }
 0x2c1   : >> { %1458 = vst [vmem:[%s2821_s11 + $0x30] sm:$0xff] %v1457_v19  ;;  %v1487_v35 = vld [vmem:[%s2825_s8 + $0xa8] sm:$0xff]  ;;  %v1489_v36 = vld [vmem:[%s2825_s8 + $0xb0] sm:$0xff]  ;;  %v1491_v37 = vld [vmem:[%s2825_s8 + $0xb8] sm:$0xff] }
 0x2c2   : >> { %1460 = vst [vmem:[%s2821_s11 + $0x38] sm:$0xff] %v1459_v20  ;;  %v1493_v38 = vld [vmem:[%s2825_s8 + $0xc0] sm:$0xff]  ;;  %v1495_v39 = vld [vmem:[%s2825_s8 + $0xc8] sm:$0xff]  ;;  %v1497_v40 = vld [vmem:[%s2825_s8 + $0xd0] sm:$0xff] }
 0x2c3   : >> { %1462 = vst [vmem:[%s2821_s11 + $0x40] sm:$0xff] %v1461_v21  ;;  %v1499_v41 = vld [vmem:[%s2825_s8 + $0xd8] sm:$0xff]  ;;  %v1501_v42 = vld [vmem:[%s2825_s8 + $0xe0] sm:$0xff]  ;;  %v1503_v25 = vld [vmem:[%s2825_s8 + $0xe8] sm:$0xff] }
 0x2c4   : >> { %1464 = vst [vmem:[%s2821_s11 + $0x48] sm:$0xff] %v1463_v22  ;;  %v1505_v43 = vld [vmem:[%s2825_s8 + $0xf0] sm:$0xff]  ;;  %v1507_v44 = vld [vmem:[%s2825_s8 + $0xf8] sm:$0xff]  ;;  %s4015_s8 = smov %s3864_s14 }
 0x2c5   : >> { %1466 = vst [vmem:[%s2821_s11 + $0x50] sm:$0xff] %v1465_v23 }
 0x2c6   : >> { %1468 = vst [vmem:[%s2821_s11 + $0x58] sm:$0xff] %v1467_v24 }
 0x2c7   : >> { %1470 = vst [vmem:[%s2821_s11 + $0x60] sm:$0xff] %v1469_v26 }
 0x2c8   : >> { %1472 = vst [vmem:[%s2821_s11 + $0x68] sm:$0xff] %v1471_v27 }
 0x2c9   : >> { %1474 = vst [vmem:[%s2821_s11 + $0x70] sm:$0xff] %v1473_v28 }
 0x2ca   : >> { %1476 = vst [vmem:[%s2821_s11 + $0x78] sm:$0xff] %v1475_v29 }
 0x2cb   : >> { %1478 = vst [vmem:[%s2821_s11 + $0x80] sm:$0xff] %v1477_v30 }
 0x2cc   : >> { %1480 = vst [vmem:[%s2821_s11 + $0x88] sm:$0xff] %v1479_v31 }
 0x2cd   : >> { %1482 = vst [vmem:[%s2821_s11 + $0x90] sm:$0xff] %v1481_v32 }
 0x2ce   : >> { %1484 = vst [vmem:[%s2821_s11 + $0x98] sm:$0xff] %v1483_v33 }
 0x2cf   : >> { %1486 = vst [vmem:[%s2821_s11 + $0xa0] sm:$0xff] %v1485_v34 }
 0x2d0   : >> { %1488 = vst [vmem:[%s2821_s11 + $0xa8] sm:$0xff] %v1487_v35 }
 0x2d1   : >> { %1490 = vst [vmem:[%s2821_s11 + $0xb0] sm:$0xff] %v1489_v36 }
 0x2d2   : >> { %1492 = vst [vmem:[%s2821_s11 + $0xb8] sm:$0xff] %v1491_v37 }
 0x2d3   : >> { %1494 = vst [vmem:[%s2821_s11 + $0xc0] sm:$0xff] %v1493_v38 }
 0x2d4   : >> { %1496 = vst [vmem:[%s2821_s11 + $0xc8] sm:$0xff] %v1495_v39 }
 0x2d5   : >> { %1498 = vst [vmem:[%s2821_s11 + $0xd0] sm:$0xff] %v1497_v40 }
 0x2d6   : >> { %1500 = vst [vmem:[%s2821_s11 + $0xd8] sm:$0xff] %v1499_v41  ;;  %1441 = sbr.rel (!%p1438_p4) target bundleno = 698 (0x2ba), region = 325 }
 0x2d7   : >> { %1502 = vst [vmem:[%s2821_s11 + $0xe0] sm:$0xff] %v1501_v42 }
 0x2d8   : >> { %1504 = vst [vmem:[%s2821_s11 + $0xe8] sm:$0xff] %v1503_v25 }
 0x2d9   : >> { %1506 = vst [vmem:[%s2821_s11 + $0xf0] sm:$0xff] %v1505_v43 }
 0x2da   : >> { %1508 = vst [vmem:[%s2821_s11 + $0xf8] sm:$0xff] %v1507_v44  ;;  %s4014_s11 = smov %s3867_s20 }
 0x2db PF: > { %s3933_s22 = sand.u32 31, %s1434_s27   ;;  %s2216_s28 = sshll.u32 %s3821_s23, 8 }
 0x2dc   : > { %s1520_s25 = scalar_lea.vmem %s3512_s29, %s2216_s28 [#allocation3]   ;;  %s1522_s5 = scalar_lea.vmem %s3674_s24, %s2216_s28  }
 0x2dd   : > { %p2146_p5 = scmp.le.s32.totalorder %s3933_s22, 0 }
 0x2de   : > { %s2835_s10 = smov (!%p2146_p5), %s1522_s5   ;;  %s2839_s18 = smov (!%p2146_p5), %s1520_s25  }
 0x2df   : > { %1795 = sbr.rel (%p2146_p5) target bundleno = 748 (0x2ec), region = 330  ;;  %s2843_s12 = smov (!%p2146_p5), 0  }
 0x2e0   : > { %s2847_s7 = smov (!%p2146_p5), 0  }
 0x2e4 LB: >> { %v1532_v45 = vld [vmem:[%s2841_s18] sm:$0xff]  ;;  %s1534_s27 = sadd.s32 1, %s2845_s12  ;;  %s1526_s7 = sadd.s32 1, %s2849_s7   ;;  %s2849_s7 = sphi %s2847_s7, %s1526_s7   ;;  %s2845_s12 = sphi %s2843_s12, %s2844_s12   ;;  %s2841_s18 = sphi %s2839_s18, %s1539_s18   ;;  %s2837_s10 = sphi %s2835_s10, %s1540_s10  }
 0x2e5   : >> { %1533 = vst [vmem:[%s2837_s10] sm:$0xff] %v1532_v45  ;;  %p1535_p7 = scmp.ge.s32.totalorder %s1534_s27, %s3933_s22  ;;  %p1525_p6 = scmp.ge.s32.totalorder %s1526_s7, %s3933_s22 }
 0x2e7   : >> { %s4049_s27 = smov (%p1535_p7, %s1534_s27), 0  ;;  %1528 = sbr.rel (!%p1525_p6) target bundleno = 740 (0x2e4), region = 336 }
 0x2e8   : >> { %s2147_s23 = sshll.u32 %s4049_s27, 3  ;;  %s2844_s12 = smov %s4049_s27  }
 0x2e9   : >> { %s1539_s18 = scalar_lea.vmem %s1520_s25, %s2147_s23 [#allocation3]   ;;  %s1540_s10 = scalar_lea.vmem %s1522_s5, %s2147_s23  }
 0x2ec PF: > { %s2854_s11 = smov 1  }
 0x2ed   : > { %s1541_s8 = sshll.u32 %s2854_s11, %s3681_s17 }
 0x2ee   : > { %s2149_s6 = sadd.s32 4294967295, %s1541_s8 }
 0x2ef   : > { %v1551_v46 = vld [vmem:[%s1431_s9] sm:%s2149_s6] }
 0x2f0   : > { %1552 = vst [vmem:[%s1433_s0] sm:%s2149_s6] %v1551_v46 }
 0x2f1 PF: > { %p2150_p8 = scmp.ge.u32.totalorder %s3676_s13, 8 }
 0x2f2   : > { %s2855_s15 = smov (!%p2150_p8), 1  }
 0x2f3   : > { %1301 = sbr.rel (%p2150_p8) target bundleno = 762 (0x2fa), region = 114  ;;  %s1302_s14 = sshll.u32 (!%p2150_p8), %s2855_s15, %s3676_s13 }
 0x2f4   : > { %s2151_s20 = sadd.s32 (!%p2150_p8), 4294967295, %s1302_s14 }
 0x2f8   : > { %v1312_v47 = vld [vmem:[%s3512_s29] sm:%s2151_s20] }
 0x2f9   : > { %1313 = vst [vmem:[%s3674_s24] sm:%s2151_s20] %v1312_v47 }
 0x2fa PF: > { %s15_s21 = sadd.s32 1, %s2721_s21   ;;  %s4017_s18 = sld [smem:[#allocation4_spill]] }
 0x2fb   : > { %p12_p9 = scmp.ge.s32.totalorder %s15_s21, 6   ;;  %s4018_s26 = sld [smem:[#allocation5_spill]] }
 0x2fc   : > { %s4019_s20 = sld [smem:[#allocation6_spill]]  ;;  %s4020_s15 = smov %s2701_s16 }
 0x2fd   : > { %s4021_s16 = smov %s2937_s30  ;;  %s4022_s17 = smov %s2713_s19 }
 0x2fe   :  { %14 = sbr.rel (!%p12_p9) target bundleno = 6 (0x6), region = 347 }
 0x301   : > { %s4023_s19 = smov %s4018_s26 }

</bundles_post_ra>
